<compile_context>
chip_gen: v5e
topology: v5e:2x2
jax: 0.10.0
libtpu: 0.0.40
codegen_flags: <defaults>
</compile_context>

<pallas_src>
import functools

import jax
import jax.numpy as jnp
from jax.experimental import pallas as pl
from jax.experimental.pallas import tpu as pltpu


def _layernorm_kernel(x_ref, g_ref, b_ref, o_ref, *, inv_d, eps):
    # x_ref: (TR, D) in input dtype; g_ref/b_ref: (1, D) (resident across grid steps)
    x = x_ref[...].astype(jnp.float32)
    # Two independent lane reductions (XLU) instead of the serialized
    # mean -> center -> square -> mean chain.
    s = jnp.sum(x, axis=-1, keepdims=True)
    ss = jnp.sum(x * x, axis=-1, keepdims=True)
    mean = s * inv_d
    var = jnp.maximum(ss * inv_d - mean * mean, 0.0)  # clamp f32 cancellation
    inv = jax.lax.rsqrt(var + eps)                    # EUP slot, effectively free
    g = g_ref[...].astype(jnp.float32)
    b = b_ref[...].astype(jnp.float32)
    o_ref[...] = ((x - mean) * inv * g + b).astype(o_ref.dtype)


def layernorm_pallas(x, gamma, beta, eps=1e-5):
    """LayerNorm over the last dim, exactly like nn.LayerNorm((D,), eps)."""
    orig_shape = x.shape
    D = orig_shape[-1]
    rows = 1
    for s in orig_shape[:-1]:
        rows *= s

    x2 = x.reshape(rows, D)
    g2 = gamma.reshape(1, D)
    b2 = beta.reshape(1, D)
    itemsize = jnp.dtype(x2.dtype).itemsize

    if rows <= 2048:
        # Single block: block dims equal the full array dims, so the (8,128)
        # divisibility rule is bypassed and no pad/slice round-trips are needed.
        tr = rows
    else:
        # Tiled path: keep double-buffered in+out (4 tiles live) under ~12 MiB so
        # it fits v5e's 16 MiB scoped-VMEM default without raising the limit, and
        # well under v7x's 64 MiB physical VMEM. Multiple grid steps let v7x's two
        # TensorCores both get work via dimension_semantics=("parallel",).
        budget = 12 * 1024 * 1024
        tr = budget // (4 * D * itemsize)
        tr = max(512, min(4096, (tr // 8) * 8))

    grid = (pl.cdiv(rows, tr),)
    kernel = functools.partial(_layernorm_kernel, inv_d=1.0 / D, eps=float(eps))

    out = pl.pallas_call(
        kernel,
        out_shape=jax.ShapeDtypeStruct((rows, D), x2.dtype),
        grid=grid,
        in_specs=[
            pl.BlockSpec((tr, D), lambda i: (i, 0)),
            pl.BlockSpec((1, D), lambda i: (0, 0)),   # gamma stays resident
            pl.BlockSpec((1, D), lambda i: (0, 0)),   # beta stays resident
        ],
        out_specs=pl.BlockSpec((tr, D), lambda i: (i, 0)),
        compiler_params=pltpu.CompilerParams(
            dimension_semantics=("parallel",),
        ),
    )(x2, g2, b2)

    return out.reshape(orig_shape)


if __name__ == "__main__":
    key = jax.random.PRNGKey(0)
    # Shape implied by the module's forward: (1, 14, 14, 384)
    x402 = jax.random.normal(key, (1, 14, 14, 384), dtype=jnp.float32)

    # nn.LayerNorm(elementwise_affine=True) init: weight=1, bias=0 (deterministic)
    gamma = jnp.ones((384,), dtype=jnp.float32)
    beta = jnp.zeros((384,), dtype=jnp.float32)

    y = layernorm_pallas(x402, gamma, beta)
    y = jax.block_until_ready(y)

    # Sanity check against pure-JAX reference (centered two-pass form)
    mean = jnp.mean(x402, axis=-1, keepdims=True)
    var = jnp.mean((x402 - mean) ** 2, axis=-1, keepdims=True)
    ref = (x402 - mean) / jnp.sqrt(var + 1e-5) * gamma + beta
    assert jnp.max(jnp.abs(y - ref)) < 1e-4, "mismatch vs reference"

    print("KERNEL_OK")
</pallas_src>

<mosaic_0001>
module attributes {stable_mosaic.version = 11 : i64} {
  func.func @_layernorm_kernel(%arg0: i32, %arg1: memref<196x384xf32, #tpu.memory_space<vmem>>, %arg2: memref<1x384xf32, #tpu.memory_space<vmem>>, %arg3: memref<1x384xf32, #tpu.memory_space<vmem>>, %arg4: memref<196x384xf32, #tpu.memory_space<vmem>>) attributes {dimension_semantics = [#tpu.dimension_semantics<parallel>], iteration_bounds = array<i64: 1>, scalar_prefetch = 0 : i64, scratch_operands = 0 : i64, tpu.core_type = #tpu.core_type<tc>, window_params = [{transform_indices = @transform_0, window_bounds = array<i64: 196, 384>}, {pipeline_mode = #tpu.pipeline_mode<synchronous>, transform_indices = @transform_1, window_bounds = array<i64: 1, 384>}, {pipeline_mode = #tpu.pipeline_mode<synchronous>, transform_indices = @transform_2, window_bounds = array<i64: 1, 384>}, {transform_indices = @transform_3, window_bounds = array<i64: 196, 384>}]} {
    %c0 = arith.constant 0 : index
    %c0_0 = arith.constant 0 : index
    %0 = vector.load %arg1[%c0, %c0_0] : memref<196x384xf32, #tpu.memory_space<vmem>>, vector<196x384xf32>
    %cst = arith.constant dense<0.000000e+00> : vector<196xf32>
    %1 = vector.multi_reduction <add>, %0, %cst [1] : vector<196x384xf32> to vector<196xf32>
    %2 = vector.shape_cast %1 : vector<196xf32> to vector<196x1xf32>
    %3 = arith.mulf %0, %0 : vector<196x384xf32>
    %cst_1 = arith.constant dense<0.000000e+00> : vector<196xf32>
    %4 = vector.multi_reduction <add>, %3, %cst_1 [1] : vector<196x384xf32> to vector<196xf32>
    %5 = vector.shape_cast %4 : vector<196xf32> to vector<196x1xf32>
    %cst_2 = arith.constant 0.00260416674 : f32
    %6 = vector.broadcast %cst_2 : f32 to vector<196x1xf32>
    %7 = arith.mulf %2, %6 : vector<196x1xf32>
    %cst_3 = arith.constant 0.00260416674 : f32
    %8 = vector.broadcast %cst_3 : f32 to vector<196x1xf32>
    %9 = arith.mulf %5, %8 : vector<196x1xf32>
    %10 = arith.mulf %7, %7 : vector<196x1xf32>
    %11 = arith.subf %9, %10 : vector<196x1xf32>
    %cst_4 = arith.constant 0.000000e+00 : f32
    %12 = vector.broadcast %cst_4 : f32 to vector<196x1xf32>
    %13 = arith.maximumf %11, %12 : vector<196x1xf32>
    %cst_5 = arith.constant 9.99999974E-6 : f32
    %14 = vector.broadcast %cst_5 : f32 to vector<196x1xf32>
    %15 = arith.addf %13, %14 : vector<196x1xf32>
    %16 = math.rsqrt %15 : vector<196x1xf32>
    %c0_6 = arith.constant 0 : index
    %c0_7 = arith.constant 0 : index
    %17 = vector.load %arg2[%c0_6, %c0_7] : memref<1x384xf32, #tpu.memory_space<vmem>>, vector<1x384xf32>
    %c0_8 = arith.constant 0 : index
    %c0_9 = arith.constant 0 : index
    %18 = vector.load %arg3[%c0_8, %c0_9] : memref<1x384xf32, #tpu.memory_space<vmem>>, vector<1x384xf32>
    %19 = vector.broadcast %7 : vector<196x1xf32> to vector<196x384xf32>
    %20 = arith.subf %0, %19 : vector<196x384xf32>
    %21 = vector.broadcast %16 : vector<196x1xf32> to vector<196x384xf32>
    %22 = arith.mulf %20, %21 : vector<196x384xf32>
    %23 = vector.broadcast %17 : vector<1x384xf32> to vector<196x384xf32>
    %24 = arith.mulf %22, %23 : vector<196x384xf32>
    %25 = vector.broadcast %18 : vector<1x384xf32> to vector<196x384xf32>
    %26 = arith.addf %24, %25 : vector<196x384xf32>
    %c0_10 = arith.constant 0 : index
    %c0_11 = arith.constant 0 : index
    %27 = vector.load %arg4[%c0_10, %c0_11] : memref<196x384xf32, #tpu.memory_space<vmem>>, vector<196x384xf32>
    tpu.vector_store %arg4[%c0_10, %c0_11], %26 {strides = array<i32>} : memref<196x384xf32, #tpu.memory_space<vmem>>, vector<196x384xf32>,
    return
  }
  func.func @transform_0(%arg0: i32) -> (i32, i32) {
    %c0_i32 = arith.constant 0 : i32
    %c0_i32_0 = arith.constant 0 : i32
    return %arg0, %c0_i32 : i32, i32
  }
  func.func @transform_1(%arg0: i32) -> (i32, i32) {
    %c0_i32 = arith.constant 0 : i32
    %c0_i32_0 = arith.constant 0 : i32
    %c0_i32_1 = arith.constant 0 : i32
    return %c0_i32, %c0_i32_0 : i32, i32
  }
  func.func @transform_2(%arg0: i32) -> (i32, i32) {
    %c0_i32 = arith.constant 0 : i32
    %c0_i32_0 = arith.constant 0 : i32
    %c0_i32_1 = arith.constant 0 : i32
    return %c0_i32, %c0_i32_0 : i32, i32
  }
  func.func @transform_3(%arg0: i32) -> (i32, i32) {
    %c0_i32 = arith.constant 0 : i32
    %c0_i32_0 = arith.constant 0 : i32
    return %arg0, %c0_i32 : i32, i32
  }
}

</mosaic_0001>

<bundles_post_ra>
// kernel: tpu_custom_call.1
= control target key start
LH: loop header
LB: loop body
LE: loop exit
PB: predicated region body
PF: predicated region fallthrough
CT: control target
= control target key end

     0   :  { %8 = vsyncpa [#allocation3], 0  ;;  %s2834_s0 = inlined_call_operand.hbm [shape: f32[196,384], index: 0, kind: input, shape index: {}]   ;;  %s2835_s1 = inlined_call_operand.hbm [shape: f32[1,384], index: 1, kind: input, shape index: {}]   ;;  %s2836_s2 = inlined_call_operand.hbm [shape: f32[1,384], index: 2, kind: input, shape index: {}]   ;;  %s2837_s3 = inlined_call_operand.hbm [shape: f32[196,384], index: 3, kind: output, shape index: {}]  }
   0x1   :  { %9 = vsyncpa [#allocation6], 0  ;;  %s29_s14 = sshll.u32 %s2835_s1, 4  ;;  %s30_s14 = int_to_ptr.hbm [resolvable:$true] %s29_s14 }
   0x2   :  { %10 = vsyncpa [#allocation4], 0  ;;  %s1399_s15 = smov [#allocation5]   ;;  %s15_s19 = sshll.u32 %s2834_s0, 4  ;;  %s16_s19 = int_to_ptr.hbm [resolvable:$true] %s15_s19 }
   0x3   :  { %s31_s16 = sshll.u32 %s1399_s15, 4  ;;  %s1400_s20 = smov [#allocation2]   ;;  %s32_s16 = int_to_ptr.vmem [resolvable:$true] %s31_s16 }
   0x4   :  { %34 = dma.hbm_to_vmem [thread:$0]  %s30_s14, 48, %s32_s16, [#allocation6]  }
   0x5   :  { %s17_s21 = sshll.u32 %s1400_s20, 4  ;;  %s1401_s22 = smov 384   ;;  %s18_s21 = int_to_ptr.vmem [resolvable:$true] %s17_s21 }
   0x6   :  { %s1402_s23 = smov 24   ;;  %s40_s25 = sshll.u32 %s2836_s2, 4  ;;  %s41_s25 = int_to_ptr.hbm [resolvable:$true] %s40_s25 }
   0x7   :  { %23 = dma.hbm_to_vmem [thread:$0]  %s16_s19, 9600, %s18_s21, [#allocation3], %s1401_s22, %s1401_s22, %s1402_s23  }
   0x8   :  { %s1403_s26 = smov [#allocation7]  }
   0x9   :  { %s42_s27 = sshll.u32 %s1403_s26, 4  ;;  %s43_s27 = int_to_ptr.vmem [resolvable:$true] %s42_s27 }
   0xa   :  { %45 = dma.hbm_to_vmem [thread:$0]  %s41_s25, 48, %s43_s27, [#allocation6]  }
   0xb   :  { %1393 = dma.done.wait [#allocation3], 9600  }
   0xc   :  { %1394 = vsyncadd [#allocation3], 4294957696 }
   0xd   :  { %1395 = dma.done.wait [#allocation6], 96  }
   0xe   :  { %1396 = vsyncadd [#allocation6], 4294967200  ;;  %v1437_v0 = vld [vmem:[#allocation2 + $0x60] sm:$0xff]  ;;  %v1439_v1 = vld [vmem:[#allocation2 + $0x68] sm:$0xff]  ;;  %vm229_vm0 = vcmask 1043456   ;;  %s1404_s0 = smov [#allocation8]  }
   0xf   :  { %2951 = vst [vmem:[#allocation12_spill] sm:$0xff] %v1437_v0  ;;  %v1441_v2 = vld [vmem:[#allocation2 + $0x70] sm:$0xff]  ;;  %v149_v3 = vadd.f32 %v1439_v1, %v1437_v0  ;;  %v1447_v5 = vld [vmem:[#allocation2 + $0x38] sm:$0xff]  ;;  %v1449_v6 = vld [vmem:[#allocation2 + $0x40] sm:$0xff]  ;;  %s1210_s2 = sshll.u32 %s1404_s0, 4  ;;  %s1212_s30 = sshll.u32 %s2837_s3, 4  ;;  %s1211_s2 = int_to_ptr.vmem [resolvable:$true] %s1210_s2  ;;  %s1213_s30 = int_to_ptr.hbm [resolvable:$true] %s1212_s30 }
  0x10   :  { %2952 = vst [vmem:[#allocation13_spill] sm:$0xff] %v1441_v2  ;;  %v1445_v4 = vld [vmem:[#allocation2 + $0x30] sm:$0xff]  ;;  %v1453_v8 = vld [vmem:[#allocation2] sm:$0xff]  ;;  %v1455_v9 = vld [vmem:[#allocation2 + $0x8] sm:$0xff] }
  0x11   :  { %2953 = vst [vmem:[#allocation14_spill] sm:$0xff] %v1445_v4  ;;  %v141_v7 = vadd.f32 %v1447_v5, %v1445_v4  ;;  %v1457_v10 = vld [vmem:[#allocation2 + $0x10] sm:$0xff]  ;;  %v150_v11 = vadd.f32 %v149_v3, %v1441_v2  ;;  %v133_v12 = vadd.f32 %v1455_v9, %v1453_v8  ;;  %v1462_v13 = vld [vmem:[#allocation2 + $0x78] sm:$0xff]  ;;  %v1464_v14 = vld [vmem:[#allocation2 + $0x80] sm:$0xff] }
  0x12   :  { %2954 = vst [vmem:[#allocation15_spill] sm:$0xff] %v1447_v5  ;;  %v1467_v16 = vld [vmem:[#allocation2 + $0x48] sm:$0xff]  ;;  %v1469_v17 = vld [vmem:[#allocation2 + $0x50] sm:$0xff]  ;;  %v153_v19 = vadd.f32 %v1464_v14, %v1462_v13  ;;  %v1474_v20 = vld [vmem:[#allocation2 + $0x18] sm:$0xff] }
  0x13   :  { %2955 = vst [vmem:[#allocation16_spill] sm:$0xff] %v1449_v6  ;;  %v142_v15 = vadd.f32 %v141_v7, %v1449_v6  ;;  %151 = vadd.xlane.f32.xlu2 %v150_v11  ;;  %v134_v18 = vadd.f32 %v133_v12, %v1457_v10  ;;  %v1476_v21 = vld [vmem:[#allocation2 + $0x20] sm:$0xff]  ;;  %v1478_v22 = vld [vmem:[#allocation2 + $0x88] sm:$0xff]  ;;  %v145_v23 = vadd.f32 %v1469_v17, %v1467_v16  ;;  %v1482_v24 = vld [vmem:[#allocation2 + $0x58] sm:$0xff] }
  0x14   :  { %2956 = vst [vmem:[#allocation17_spill] sm:$0xff] %v1453_v8  ;;  %v137_v25 = vadd.f32 %v1476_v21, %v1474_v20  ;;  %v1486_v26 = vld [vmem:[#allocation2 + $0x28] sm:$0xff]  ;;  %v154_v27 = vadd.f32 %v153_v19, %v1478_v22  ;;  %v1490_v29 = vld [vmem:[#allocation2 + $0xc0] sm:$0xff]  ;;  %v1497_v33 = vld [vmem:[#allocation2 + $0xb0] sm:$0xff] }
  0x15   :  { %2957 = vst [vmem:[#allocation18_spill] sm:$0xff] %v1455_v9  ;;  %143 = vadd.xlane.f32.xlu1 %v142_v15  ;;  %135 = vadd.xlane.f32.xlu0 %v134_v18  ;;  %v146_v28 = vadd.f32 %v145_v23, %v1482_v24  ;;  %v1492_v30 = vld [vmem:[#allocation2 + $0xc8] sm:$0xff]  ;;  %v1499_v34 = vld [vmem:[#allocation2 + $0x90] sm:$0xff]  ;;  %v1501_v35 = vld [vmem:[#allocation2 + $0x98] sm:$0xff] }
  0x16   :  { %2958 = vst [vmem:[#allocation19_spill] sm:$0xff] %v1462_v13  ;;  %v138_v31 = vadd.f32 %v137_v25, %v1486_v26  ;;  %v1495_v32 = vld [vmem:[#allocation2 + $0xa8] sm:$0xff]  ;;  %v165_v36 = vadd.f32 %v1492_v30, %v1490_v29  ;;  %v1505_v37 = vld [vmem:[#allocation2 + $0xd0] sm:$0xff]  ;;  %v1509_v39 = vld [vmem:[#allocation2 + $0xb8] sm:$0xff]  ;;  %v157_v40 = vadd.f32 %v1501_v35, %v1499_v34 }
  0x17   :  { %2959 = vst [vmem:[#allocation20_spill] sm:$0xff] %v1464_v14  ;;  %v161_v38 = vadd.f32 %v1497_v33, %v1495_v32  ;;  %v1513_v41 = vld [vmem:[#allocation2 + $0xa0] sm:$0xff]  ;;  %v1517_v44 = vld [vmem:[#allocation2 + $0x108] sm:$0xff]  ;;  %v1519_v45 = vld [vmem:[#allocation2 + $0x110] sm:$0xff] }
  0x18   :  { %2960 = vst [vmem:[#allocation21_spill] sm:$0xff] %v1467_v16  ;;  %v166_v42 = vadd.f32 %v165_v36, %v1505_v37  ;;  %v158_v46 = vadd.f32 %v157_v40, %v1513_v41  ;;  %v1522_v47 = vld [vmem:[#allocation2 + $0xf0] sm:$0xff]  ;;  %v1524_v48 = vld [vmem:[#allocation2 + $0xf8] sm:$0xff]  ;;  %v1528_v50 = vld [vmem:[#allocation2 + $0xe0] sm:$0xff]  ;;  %v177_v51 = vadd.f32 %v1519_v45, %v1517_v44 }
  0x19   :  { %2961 = vst [vmem:[#allocation22_spill] sm:$0xff] %v1469_v17  ;;  %v162_v43 = vadd.f32 %v161_v38, %v1509_v39  ;;  %v1526_v49 = vld [vmem:[#allocation2 + $0xd8] sm:$0xff]  ;;  %v173_v53 = vadd.f32 %v1524_v48, %v1522_v47  ;;  %v1536_v54 = vld [vmem:[#allocation2 + $0x100] sm:$0xff]  ;;  %v1540_v56 = vld [vmem:[#allocation2 + $0xe8] sm:$0xff] }
  0x1a   :  { %2962 = vst [vmem:[#allocation23_spill] sm:$0xff] %v1474_v20  ;;  %v1532_v52 = vld [vmem:[#allocation2 + $0x118] sm:$0xff]  ;;  %v169_v55 = vadd.f32 %v1528_v50, %v1526_v49  ;;  %v1544_v59 = vld [vmem:[#allocation2 + $0x150] sm:$0xff]  ;;  %v1551_v63 = vld [vmem:[#allocation2 + $0x140] sm:$0xff] }
  0x1b   :  { %2963 = vst [vmem:[#allocation24_spill] sm:$0xff] %v1476_v21  ;;  %155 = vadd.xlane.f32.xlu2 %v154_v27  ;;  %v178_v57 = vadd.f32 %v177_v51, %v1532_v52  ;;  %v174_v58 = vadd.f32 %v173_v53, %v1536_v54  ;;  %v1546_v60 = vld [vmem:[#allocation2 + $0x158] sm:$0xff]  ;;  %v1553_v3 = vld [vmem:[#allocation2 + $0x120] sm:$0xff]  ;;  %v1555_v7 = vld [vmem:[#allocation2 + $0x128] sm:$0xff] }
  0x1c   :  { %2964 = vst [vmem:[#allocation25_spill] sm:$0xff] %v1478_v22  ;;  %v170_v61 = vadd.f32 %v169_v55, %v1540_v56  ;;  %v1549_v62 = vld [vmem:[#allocation2 + $0x138] sm:$0xff]  ;;  %v189_v11 = vadd.f32 %v1546_v60, %v1544_v59  ;;  %v1559_v12 = vld [vmem:[#allocation2 + $0x160] sm:$0xff]  ;;  %v1563_v18 = vld [vmem:[#allocation2 + $0x148] sm:$0xff]  ;;  %v181_v19 = vadd.f32 %v1555_v7, %v1553_v3 }
  0x1d   :  { %2965 = vst [vmem:[#allocation26_spill] sm:$0xff] %v1482_v24  ;;  %147 = vadd.xlane.f32.xlu1 %v146_v28  ;;  %139 = vadd.xlane.f32.xlu0 %v138_v31  ;;  %v185_v15 = vadd.f32 %v1551_v63, %v1549_v62  ;;  %v1567_v23 = vld [vmem:[#allocation2 + $0x130] sm:$0xff]  ;;  %v1571_v28 = vld [vmem:[#allocation2 + $0x198] sm:$0xff]  ;;  %v1573_v31 = vld [vmem:[#allocation2 + $0x1a0] sm:$0xff] }
  0x1e   :  { %2966 = vst [vmem:[#allocation27_spill] sm:$0xff] %v1486_v26  ;;  %v190_v25 = vadd.f32 %v189_v11, %v1559_v12  ;;  %v182_v36 = vadd.f32 %v181_v19, %v1567_v23  ;;  %v1576_v38 = vld [vmem:[#allocation2 + $0x180] sm:$0xff]  ;;  %v1578_v40 = vld [vmem:[#allocation2 + $0x188] sm:$0xff]  ;;  %v1590_v55 = vld [vmem:[#allocation2 + $0x190] sm:$0xff] }
  0x1f   :  { %2967 = vst [vmem:[#allocation28_spill] sm:$0xff] %v1490_v29  ;;  %v186_v27 = vadd.f32 %v185_v15, %v1563_v18  ;;  %v1586_v51 = vld [vmem:[#allocation2 + $0x1a8] sm:$0xff]  ;;  %v197_v53 = vadd.f32 %v1578_v40, %v1576_v38  ;;  %v1598_v15 = vld [vmem:[#allocation2 + $0x1e0] sm:$0xff] }
  0x20   :  { %2968 = vst [vmem:[#allocation29_spill] sm:$0xff] %v1492_v30  ;;  %v1600_v19 = vld [vmem:[#allocation2 + $0x1e8] sm:$0xff] }
  0x21   :  { %2969 = vst [vmem:[#allocation30_spill] sm:$0xff] %v1505_v37  ;;  %v198_v11 = vadd.f32 %v197_v53, %v1590_v55  ;;  %v1613_v53 = vld [vmem:[#allocation2 + $0x1f0] sm:$0xff] }
  0x22   :  { %2970 = vst [vmem:[#allocation31_spill] sm:$0xff] %v1517_v44 }
  0x23   :  { %2971 = vst [vmem:[#allocation32_spill] sm:$0xff] %v1519_v45  ;;  %167 = vadd.xlane.f32.xlu2 %v166_v42  ;;  %v1580_v42 = vld [vmem:[#allocation2 + $0x168] sm:$0xff] }
  0x24   :  { %2972 = vst [vmem:[#allocation33_spill] sm:$0xff] %v1524_v48 }
  0x25   :  { %2973 = vst [vmem:[#allocation34_spill] sm:$0xff] %v1526_v49  ;;  %163 = vadd.xlane.f32.xlu1 %v162_v43  ;;  %159 = vadd.xlane.f32.xlu0 %v158_v46  ;;  %v1582_v43 = vld [vmem:[#allocation2 + $0x170] sm:$0xff]  ;;  %v201_v46 = vadd.f32 %v1573_v31, %v1571_v28 }
  0x26   :  { %2974 = vst [vmem:[#allocation35_spill] sm:$0xff] %v1528_v50 }
  0x27   :  { %2975 = vst [vmem:[#allocation36_spill] sm:$0xff] %v1532_v52 }
  0x28   :  { %2976 = vst [vmem:[#allocation37_spill] sm:$0xff] %v1536_v54 }
  0x29   :  { %2977 = vst [vmem:[#allocation38_spill] sm:$0xff] %v1540_v56 }
  0x2a   :  { %2978 = vst [vmem:[#allocation39_spill] sm:$0xff] %v1544_v59 }
  0x2b   :  { %2979 = vst [vmem:[#allocation40_spill] sm:$0xff] %v1546_v60  ;;  %179 = vadd.xlane.f32.xlu2 %v178_v57  ;;  %v193_v57 = vadd.f32 %v1582_v43, %v1580_v42  ;;  %v1625_v60 = vld [vmem:[#allocation2 + $0x228] sm:$0xff] }
  0x2c   :  { %2980 = vst [vmem:[#allocation41_spill] sm:$0xff] %v1549_v62 }
  0x2d   :  { %2981 = vst [vmem:[#allocation42_spill] sm:$0xff] %v1551_v63  ;;  %175 = vadd.xlane.f32.xlu1 %v174_v58  ;;  %171 = vadd.xlane.f32.xlu0 %v170_v61  ;;  %v1594_v58 = vld [vmem:[#allocation2 + $0x178] sm:$0xff]  ;;  %v202_v61 = vadd.f32 %v201_v46, %v1586_v51  ;;  %v213_v46 = vadd.f32 %v1600_v19, %v1598_v15 }
  0x2e   :  { %2982 = vst [vmem:[#allocation43_spill] sm:$0xff] %v1553_v3 }
  0x2f   :  { %2983 = vst [vmem:[#allocation44_spill] sm:$0xff] %v1555_v7 }
  0x30   :  { %2984 = vst [vmem:[#allocation45_spill] sm:$0xff] %v1559_v12 }
  0x31   :  { %2985 = vst [vmem:[#allocation46_spill] sm:$0xff] %v1563_v18 }
  0x32   :  { %2986 = vst [vmem:[#allocation47_spill] sm:$0xff] %v1567_v23 }
  0x33   :  { %2987 = vst [vmem:[#allocation48_spill] sm:$0xff] %v1571_v28  ;;  %191 = vadd.xlane.f32.xlu2 %v190_v25  ;;  %v194_v25 = vadd.f32 %v193_v57, %v1594_v58  ;;  %v1609_v28 = vld [vmem:[#allocation2 + $0x1b8] sm:$0xff] }
  0x34   :  { %2988 = vst [vmem:[#allocation49_spill] sm:$0xff] %v1573_v31  ;;  %v1607_v31 = vld [vmem:[#allocation2 + $0x1b0] sm:$0xff]  ;;  %v1617_v57 = vld [vmem:[#allocation2 + $0x1d8] sm:$0xff] }
  0x35   :  { %2989 = vst [vmem:[#allocation50_spill] sm:$0xff] %v1576_v38  ;;  %187 = vadd.xlane.f32.xlu1 %v186_v27  ;;  %183 = vadd.xlane.f32.xlu0 %v182_v36  ;;  %v1603_v27 = vld [vmem:[#allocation2 + $0x1c8] sm:$0xff]  ;;  %v1605_v36 = vld [vmem:[#allocation2 + $0x1d0] sm:$0xff]  ;;  %v205_v12 = vadd.f32 %v1609_v28, %v1607_v31 }
  0x36   :  { %2990 = vst [vmem:[#allocation51_spill] sm:$0xff] %v1578_v40 }
  0x37   :  { %2991 = vst [vmem:[#allocation52_spill] sm:$0xff] %v1580_v42 }
  0x38   :  { %2992 = vst [vmem:[#allocation53_spill] sm:$0xff] %v1582_v43 }
  0x39   :  { %2993 = vst [vmem:[#allocation54_spill] sm:$0xff] %v1586_v51  ;;  %v209_v51 = vadd.f32 %v1605_v36, %v1603_v27 }
  0x3a   :  { %2994 = vst [vmem:[#allocation55_spill] sm:$0xff] %v1590_v55  ;;  %v214_v55 = vadd.f32 %v213_v46, %v1613_v53 }
  0x3b   :  { %2995 = vst [vmem:[#allocation56_spill] sm:$0xff] %v1594_v58  ;;  %203 = vadd.xlane.f32.xlu2 %v202_v61  ;;  %v1621_v58 = vld [vmem:[#allocation2 + $0x1c0] sm:$0xff]  ;;  %v210_v61 = vadd.f32 %v209_v51, %v1617_v57  ;;  %v1640_v51 = vld [vmem:[#allocation2 + $0x238] sm:$0xff] }
  0x3c   :  { %2996 = vst [vmem:[#allocation57_spill] sm:$0xff] %v1598_v15  ;;  %v1630_v15 = vld [vmem:[#allocation2 + $0x210] sm:$0xff] }
  0x3d   :  { %2997 = vst [vmem:[#allocation58_spill] sm:$0xff] %v1600_v19  ;;  %199 = vadd.xlane.f32.xlu1 %v198_v11  ;;  %195 = vadd.xlane.f32.xlu0 %v194_v25  ;;  %v1627_v11 = vld [vmem:[#allocation2 + $0x230] sm:$0xff]  ;;  %v206_v19 = vadd.f32 %v205_v12, %v1621_v58  ;;  %v1632_v25 = vld [vmem:[#allocation2 + $0x218] sm:$0xff]  ;;  %v1644_v12 = vld [vmem:[#allocation2 + $0x220] sm:$0xff] }
  0x3e   :  { %2998 = vst [vmem:[#allocation59_spill] sm:$0xff] %v1603_v27  ;;  %v1636_v27 = vld [vmem:[#allocation2 + $0x200] sm:$0xff]  ;;  %v225_v46 = vadd.f32 %v1627_v11, %v1625_v60 }
  0x3f   :  { %2999 = vst [vmem:[#allocation60_spill] sm:$0xff] %v1605_v36  ;;  %v1634_v36 = vld [vmem:[#allocation2 + $0x1f8] sm:$0xff] }
  0x40   :  { %3000 = vst [vmem:[#allocation61_spill] sm:$0xff] %v1607_v31 }
  0x41   :  { %3001 = vst [vmem:[#allocation62_spill] sm:$0xff] %v1609_v28  ;;  %v226_v28 = vadd.f32 %v225_v46, %v1640_v51 }
  0x42   :  { %3002 = vst [vmem:[#allocation63_spill] sm:$0xff] %v1613_v53  ;;  %v221_v53 = vadd.f32 %v1632_v25, %v1630_v15 }
  0x43   :  { %3003 = vst [vmem:[#allocation64_spill] sm:$0xff] %v1617_v57  ;;  %215 = vadd.xlane.f32.xlu2 %v214_v55  ;;  %v1648_v57 = vld [vmem:[#allocation2 + $0x208] sm:$0xff]  ;;  %v240_v55 = vmul.f32 %v1474_v20, %v1474_v20 }
  0x44   :  { %3004 = vst [vmem:[#allocation65_spill] sm:$0xff] %v1621_v58  ;;  %v217_v58 = vadd.f32 %v1636_v27, %v1634_v36 }
  0x45   :  { %3005 = vst [vmem:[#allocation66_spill] sm:$0xff] %v1625_v60  ;;  %211 = vadd.xlane.f32.xlu1 %v210_v61  ;;  %207 = vadd.xlane.f32.xlu0 %v206_v19  ;;  %v241_v61 = vmul.f32 %v1476_v21, %v1476_v21  ;;  %v1657_v60 = vld [vmem:[#allocation2 + $0x248] sm:$0xf]  ;;  %v222_v19 = vadd.f32 %v221_v53, %v1644_v12  ;;  %v1671_v53 = vld [vmem:[#allocation2 + $0x250] sm:$0xf] }
  0x46   :  { %3006 = vst [vmem:[#allocation67_spill] sm:$0xff] %v1627_v11  ;;  %v1655_v11 = vld [vmem:[#allocation2 + $0x240] sm:$0xf]  ;;  %v218_v46 = vadd.f32 %v217_v58, %v1648_v57  ;;  %v231_v21 = vsel %vm229_vm0, %v1657_v60, 0.0 }
  0x47   :  { %3007 = vst [vmem:[#allocation68_spill] sm:$0xff] %v1632_v25  ;;  %v230_v20 = vsel %vm229_vm0, %v1655_v11, 0.0  ;;  %v316_v25 = vadd.f32 %v241_v61, %v240_v55  ;;  %v246_v61 = vmul.f32 %v1467_v16, %v1467_v16 }
  0x48   :  { %3008 = vst [vmem:[#allocation69_spill] sm:$0xff] %v1634_v36  ;;  %v238_v36 = vmul.f32 %v1455_v9, %v1455_v9  ;;  %v232_v58 = vadd.f32 %v231_v21, %v230_v20  ;;  %v243_v20 = vmul.f32 %v1445_v4, %v1445_v4  ;;  %v244_v21 = vmul.f32 %v1447_v5, %v1447_v5 }
  0x49   :  { %3009 = vst [vmem:[#allocation70_spill] sm:$0xff] %v1636_v27  ;;  %v237_v27 = vmul.f32 %v1453_v8, %v1453_v8  ;;  %v239_v8 = vmul.f32 %v1457_v10, %v1457_v10 }
  0x4a   :  { %3010 = vst [vmem:[#allocation71_spill] sm:$0xff] %v1640_v51  ;;  %v242_v51 = vmul.f32 %v1486_v26, %v1486_v26  ;;  %v250_v26 = vmul.f32 %v1439_v1, %v1439_v1 }
  0x4b   :  { %3011 = vst [vmem:[#allocation72_spill] sm:$0xff] %v1648_v57  ;;  %227 = vadd.xlane.f32.xlu2 %v226_v28  ;;  %v312_v9 = vadd.f32 %v238_v36, %v237_v27  ;;  %v249_v28 = vmul.f32 %v1437_v0, %v1437_v0  ;;  %v251_v36 = vmul.f32 %v1441_v2, %v1441_v2  ;;  %v3045_v0 = vld [vmem:[#allocation23_spill] sm:$0xff] }
  0x4c   :  { %3012 = vst [vmem:[#allocation73_spill] sm:$0xff] %v1655_v11  ;;  %v233_v11 = vsel %vm229_vm0, %v1671_v53, 0.0  ;;  %v317_v57 = vadd.f32 %v316_v25, %v242_v51  ;;  %v320_v51 = vadd.f32 %v244_v21, %v243_v20  ;;  %v257_v21 = vmul.f32 %v1513_v41, %v1513_v41 }
  0x4d   :  { %223 = vadd.xlane.f32.xlu1 %v222_v19  ;;  %219 = vadd.xlane.f32.xlu0 %v218_v46  ;;  %v313_v55 = vadd.f32 %v312_v9, %v239_v8  ;;  %v247_v19 = vmul.f32 %v1469_v17, %v1469_v17  ;;  %v234_v27 = vadd.f32 %v233_v11, %v232_v58 }
  0x4e   :  { %v328_v25 = vadd.f32 %v250_v26, %v249_v28  ;;  %v248_v8 = vmul.f32 %v1482_v24, %v1482_v24  ;;  %v245_v11 = vmul.f32 %v1449_v6, %v1449_v6  ;;  %v258_v58 = vmul.f32 %v1495_v32, %v1495_v32 }
  0x4f   :  { %v324_v9 = vadd.f32 %v247_v19, %v246_v61  ;;  %v255_v26 = vmul.f32 %v1499_v34, %v1499_v34  ;;  %v256_v28 = vmul.f32 %v1501_v35, %v1501_v35  ;;  %v252_v61 = vmul.f32 %v1462_v13, %v1462_v13 }
  0x50   :  { %v329_v46 = vadd.f32 %v328_v25, %v251_v36  ;;  %v253_v19 = vmul.f32 %v1464_v14, %v1464_v14  ;;  %v254_v25 = vmul.f32 %v1478_v22, %v1478_v22 }
  0x51   :  { %v325_v17 = vadd.f32 %v324_v9, %v248_v8  ;;  %v336_v36 = vadd.f32 %v256_v28, %v255_v26  ;;  %v261_v26 = vmul.f32 %v1490_v29, %v1490_v29  ;;  %v262_v28 = vmul.f32 %v1492_v30, %v1492_v30 }
  0x52   :  { %v332_v8 = vadd.f32 %v253_v19, %v252_v61  ;;  %v266_v19 = vmul.f32 %v1540_v56, %v1540_v56 }
  0x53   :  { %318 = vadd.xlane.f32.xlu2 %v317_v57  ;;  %v259_v57 = vmul.f32 %v1497_v33, %v1497_v33 }
  0x55   :  { %314 = vadd.xlane.f32.xlu1 %v313_v55  ;;  %235 = vadd.xlane.f32.xlu0 %v234_v27  ;;  %v321_v55 = vadd.f32 %v320_v51, %v245_v11  ;;  %v260_v27 = vmul.f32 %v1509_v39, %v1509_v39  ;;  %v340_v20 = vadd.f32 %v259_v57, %v258_v58 }
  0x56   :  { %v267_v11 = vmul.f32 %v1522_v47, %v1522_v47  ;;  %v268_v51 = vmul.f32 %v1524_v48, %v1524_v48  ;;  %v265_v58 = vmul.f32 %v1528_v50, %v1528_v50  ;;  %v333_v57 = vadd.f32 %v332_v8, %v254_v25 }
  0x57   :  { %v341_v9 = vadd.f32 %v340_v20, %v260_v27  ;;  %v263_v20 = vmul.f32 %v1505_v37, %v1505_v37  ;;  %v276_v25 = vmul.f32 %v1549_v62, %v1549_v62  ;;  %v277_v8 = vmul.f32 %v1551_v63, %v1551_v63 }
  0x58   :  { %v352_v61 = vadd.f32 %v268_v51, %v267_v11  ;;  %v273_v11 = vmul.f32 %v1553_v3, %v1553_v3  ;;  %v274_v51 = vmul.f32 %v1555_v7, %v1555_v7 }
  0x5b   :  { %330 = vadd.xlane.f32.xlu2 %v329_v46  ;;  %v337_v46 = vadd.f32 %v336_v36, %v257_v21  ;;  %v344_v21 = vadd.f32 %v262_v28, %v261_v26  ;;  %v364_v26 = vadd.f32 %v277_v8, %v276_v25  ;;  %v275_v28 = vmul.f32 %v1567_v23, %v1567_v23  ;;  %v3018_v23 = vld [vmem:[#allocation60_spill] sm:$0xff] }
  0x5c   :  { %v282_v25 = vmul.f32 %v1580_v42, %v1580_v42  ;;  %v283_v8 = vmul.f32 %v1582_v43, %v1582_v43  ;;  %v3017_v42 = vld [vmem:[#allocation59_spill] sm:$0xff]  ;;  %v295_v7 = vmul.f32 %v3018_v23, %v3018_v23  ;;  %v3023_v23 = vld [vmem:[#allocation65_spill] sm:$0xff] }
  0x5d   :  { %326 = vadd.xlane.f32.xlu1 %v325_v17  ;;  %322 = vadd.xlane.f32.xlu0 %v321_v55  ;;  %v264_v17 = vmul.f32 %v1526_v49, %v1526_v49  ;;  %v269_v55 = vmul.f32 %v1536_v54, %v1536_v54 }
  0x5f   :  { %v348_v27 = vadd.f32 %v265_v58, %v264_v17  ;;  %v353_v36 = vadd.f32 %v352_v61, %v269_v55  ;;  %v270_v17 = vmul.f32 %v1517_v44, %v1517_v44  ;;  %v271_v58 = vmul.f32 %v1519_v45, %v1519_v45 }
  0x60   :  { %v360_v55 = vadd.f32 %v274_v51, %v273_v11  ;;  %v272_v61 = vmul.f32 %v1532_v52, %v1532_v52  ;;  %v279_v11 = vmul.f32 %v1544_v59, %v1544_v59  ;;  %v3013_v51 = vld [vmem:[#allocation40_spill] sm:$0xff] }
  0x63   :  { %342 = vadd.xlane.f32.xlu2 %v341_v9  ;;  %v349_v9 = vadd.f32 %v348_v27, %v266_v19  ;;  %v356_v19 = vadd.f32 %v271_v58, %v270_v17  ;;  %v285_v27 = vmul.f32 %v1576_v38, %v1576_v38  ;;  %v3014_v17 = vld [vmem:[#allocation55_spill] sm:$0xff] }
  0x64   :  { %v287_v58 = vmul.f32 %v3014_v17, %v3014_v17  ;;  %v303_v17 = vmul.f32 %v1630_v15, %v1630_v15  ;;  %v3030_v15 = vld [vmem:[#allocation72_spill] sm:$0xff] }
  0x65   :  { %338 = vadd.xlane.f32.xlu1 %v337_v46  ;;  %334 = vadd.xlane.f32.xlu0 %v333_v57  ;;  %v345_v46 = vadd.f32 %v344_v21, %v263_v20  ;;  %v278_v57 = vmul.f32 %v1563_v18, %v1563_v18  ;;  %v286_v20 = vmul.f32 %v1578_v40, %v1578_v40 }
  0x66   :  { %v294_v40 = vmul.f32 %v3017_v42, %v3017_v42  ;;  %v293_v42 = vmul.f32 %v3023_v23, %v3023_v23 }
  0x67   :  { %v365_v21 = vadd.f32 %v364_v26, %v278_v57  ;;  %v376_v38 = vadd.f32 %v286_v20, %v285_v27  ;;  %v3015_v57 = vld [vmem:[#allocation56_spill] sm:$0xff]  ;;  %v291_v27 = vmul.f32 %v1607_v31, %v1607_v31  ;;  %v3019_v20 = vld [vmem:[#allocation62_spill] sm:$0xff] }
  0x68   :  { %v284_v26 = vmul.f32 %v3015_v57, %v3015_v57  ;;  %v3021_v57 = vld [vmem:[#allocation49_spill] sm:$0xff] }
  0x69   :  { %v377_v43 = vadd.f32 %v376_v38, %v287_v58  ;;  %v289_v38 = vmul.f32 %v3021_v57, %v3021_v57  ;;  %v388_v58 = vadd.f32 %v295_v7, %v294_v40  ;;  %v3027_v40 = vld [vmem:[#allocation70_spill] sm:$0xff] }
  0x6b   :  { %354 = vadd.xlane.f32.xlu2 %v353_v36  ;;  %v361_v36 = vadd.f32 %v360_v55, %v275_v28  ;;  %v372_v28 = vadd.f32 %v283_v8, %v282_v25  ;;  %v3016_v55 = vld [vmem:[#allocation45_spill] sm:$0xff]  ;;  %v3020_v8 = vld [vmem:[#allocation48_spill] sm:$0xff] }
  0x6d   :  { %350 = vadd.xlane.f32.xlu1 %v349_v9  ;;  %346 = vadd.xlane.f32.xlu0 %v345_v46  ;;  %v357_v9 = vadd.f32 %v356_v19, %v272_v61  ;;  %v280_v46 = vmul.f32 %v3013_v51, %v3013_v51  ;;  %v281_v61 = vmul.f32 %v3016_v55, %v3016_v55 }
  0x6f   :  { %v368_v19 = vadd.f32 %v280_v46, %v279_v11  ;;  %v3022_v11 = vld [vmem:[#allocation64_spill] sm:$0xff] }
  0x70   :  { %v296_v46 = vmul.f32 %v3022_v11, %v3022_v11  ;;  %v3026_v11 = vld [vmem:[#allocation69_spill] sm:$0xff] }
  0x71   :  { %v369_v25 = vadd.f32 %v368_v19, %v281_v61  ;;  %v300_v7 = vmul.f32 %v3026_v11, %v3026_v11 }
  0x72   :  { %v389_v61 = vadd.f32 %v388_v58, %v296_v46  ;;  %v302_v46 = vmul.f32 %v3030_v15, %v3030_v15  ;;  %v3031_v58 = vld [vmem:[#allocation63_spill] sm:$0xff] }
  0x73   :  { %366 = vadd.xlane.f32.xlu2 %v365_v21  ;;  %v292_v21 = vmul.f32 %v3019_v20, %v3019_v20  ;;  %v3024_v20 = vld [vmem:[#allocation54_spill] sm:$0xff] }
  0x75   :  { %362 = vadd.xlane.f32.xlu1 %v361_v36  ;;  %358 = vadd.xlane.f32.xlu0 %v357_v9  ;;  %v373_v36 = vadd.f32 %v372_v28, %v284_v26  ;;  %v288_v9 = vmul.f32 %v3020_v8, %v3020_v8  ;;  %v384_v31 = vadd.f32 %v292_v21, %v291_v27  ;;  %v3028_v21 = vld [vmem:[#allocation57_spill] sm:$0xff] }
  0x76   :  { %v290_v26 = vmul.f32 %v3024_v20, %v3024_v20  ;;  %v301_v27 = vmul.f32 %v3027_v40, %v3027_v40 }
  0x77   :  { %v380_v28 = vadd.f32 %v289_v38, %v288_v9  ;;  %v385_v19 = vadd.f32 %v384_v31, %v293_v42  ;;  %v305_v31 = vmul.f32 %v1644_v12, %v1644_v12 }
  0x78   :  { %v396_v11 = vadd.f32 %v301_v27, %v300_v7  ;;  %v311_v27 = vmul.f32 %v1671_v53, %v1671_v53 }
  0x79   :  { %v381_v38 = vadd.f32 %v380_v28, %v290_v26  ;;  %v310_v26 = vmul.f32 %v1657_v60, %v1657_v60 }
  0x7b   :  { %378 = vadd.xlane.f32.xlu2 %v377_v43  ;;  %v3025_v43 = vld [vmem:[#allocation68_spill] sm:$0xff] }
  0x7c   :  { %v304_v57 = vmul.f32 %v3025_v43, %v3025_v43  ;;  %v299_v43 = vmul.f32 %v3031_v58, %v3031_v58 }
  0x7d   :  { %374 = vadd.xlane.f32.xlu1 %v373_v36  ;;  %370 = vadd.xlane.f32.xlu0 %v369_v25  ;;  %v297_v36 = vmul.f32 %v3028_v21, %v3028_v21  ;;  %v3029_v25 = vld [vmem:[#allocation58_spill] sm:$0xff]  ;;  %v3032_v21 = vld [vmem:[#allocation73_spill] sm:$0xff] }
  0x7e   :  { %v298_v9 = vmul.f32 %v3029_v25, %v3029_v25  ;;  %v400_v42 = vadd.f32 %v304_v57, %v303_v17  ;;  %v309_v23 = vmul.f32 %v3032_v21, %v3032_v21  ;;  %v397_v57 = vadd.f32 %v396_v11, %v302_v46  ;;  %v3033_v25 = vld [vmem:[#allocation66_spill] sm:$0xff] }
  0x7f   :  { %v306_v7 = vmul.f32 %v3033_v25, %v3033_v25 }
  0x80   :  { %v392_v40 = vadd.f32 %v298_v9, %v297_v36  ;;  %v401_v12 = vadd.f32 %v400_v42, %v305_v31  ;;  %v408_v36 = vsel %vm229_vm0, %v309_v23, 0.0  ;;  %v409_v9 = vsel %vm229_vm0, %v310_v26, 0.0  ;;  %v3035_v42 = vld [vmem:[#allocation71_spill] sm:$0xff] }
  0x81   :  { %v410_v60 = vadd.f32 %v409_v9, %v408_v36  ;;  %v411_v31 = vsel %vm229_vm0, %v311_v27, 0.0  ;;  %v308_v46 = vmul.f32 %v3035_v42, %v3035_v42 }
  0x83   :  { %390 = vadd.xlane.f32.xlu2 %v389_v61 }
  0x85   :  { %386 = vadd.xlane.f32.xlu1 %v385_v19  ;;  %382 = vadd.xlane.f32.xlu0 %v381_v38  ;;  %v393_v19 = vadd.f32 %v392_v40, %v299_v43  ;;  %v3034_v38 = vld [vmem:[#allocation67_spill] sm:$0xff]  ;;  %v412_v40 = vadd.f32 %v411_v31, %v410_v60 }
  0x86   :  { %v152_v28 = vpop.xlane.xlu2 %151  ;;  %v307_v15 = vmul.f32 %v3034_v38, %v3034_v38 }
  0x87   :  { %v1830_v60 = vmul.f32 0.0026041667, %v152_v28  ;;  %v3042_v28 = vld [vmem:[#allocation18_spill] sm:$0xff] }
  0x88   :  { %v144_v61 = vpop.xlane.xlu1 %143  ;;  %v136_v17 = vpop.xlane.xlu0 %135  ;;  %v404_v11 = vadd.f32 %v307_v15, %v306_v7 }
  0x89   :  { %v1832_v31 = vmul.f32 0.0026041667, %v144_v61  ;;  %v3046_v61 = vld [vmem:[#allocation24_spill] sm:$0xff] }
  0x8a   :  { %v405_v23 = vadd.f32 %v404_v11, %v308_v46  ;;  %v1836_v46 = vmul.f32 0.0026041667, %v136_v17 }
  0x8b   :  { %402 = vadd.xlane.f32.xlu2 %v401_v12  ;;  %3036 = vst [vmem:[#allocation68_spill] sm:$0xff] %v1832_v31 }
  0x8d   :  { %398 = vadd.xlane.f32.xlu1 %v397_v57  ;;  %394 = vadd.xlane.f32.xlu0 %v393_v19 }
  0x8e   :  { %v156_v58 = vpop.xlane.xlu2 %155 }
  0x8f   :  { %v1846_v8 = vmul.f32 0.0026041667, %v156_v58  ;;  %v1864_v58 = vmul.f32 %v1830_v60, %v1830_v60 }
  0x90   :  { %v148_v43 = vpop.xlane.xlu1 %147  ;;  %v140_v53 = vpop.xlane.xlu0 %139 }
  0x91   :  { %3039 = vst [vmem:[#allocation57_spill] sm:$0xff] %v1846_v8  ;;  %v1860_v20 = vmul.f32 0.0026041667, %v140_v53 }
  0x93   :  { %v466_v14 = vmul.f32 %v1860_v20, %v1860_v20 }
  0x95   :  { %413 = vadd.xlane.f32.xlu1 %v412_v40  ;;  %406 = vadd.xlane.f32.xlu0 %v405_v23  ;;  %v3041_v23 = vld [vmem:[#allocation17_spill] sm:$0xff] }
  0x96   :  { %v168_v21 = vpop.xlane.xlu2 %167 }
  0x97   :  { %v1884_v6 = vmul.f32 0.0026041667, %v168_v21 }
  0x98   :  { %v164_v26 = vpop.xlane.xlu1 %163  ;;  %v160_v25 = vpop.xlane.xlu0 %159 }
  0x99   :  { %3043 = vst [vmem:[#allocation72_spill] sm:$0xff] %v1884_v6  ;;  %v1892_v2 = vmul.f32 0.0026041667, %v164_v26  ;;  %v1900_v22 = vmul.f32 0.0026041667, %v160_v25  ;;  %v1918_v25 = vmul.f32 %v1846_v8, %v1846_v8  ;;  %v1956_v5 = vmul.f32 %v1884_v6, %v1884_v6 }
  0x9b   :  { %v1944_v26 = vmul.f32 %v1892_v2, %v1892_v2  ;;  %v1952_v8 = vmul.f32 %v1900_v22, %v1900_v22 }
  0x9e   :  { %v180_v12 = vpop.xlane.xlu2 %179 }
  0x9f   :  { %v1910_v17 = vmul.f32 0.0026041667, %v180_v12 }
  0xa0   :  { %v176_v57 = vpop.xlane.xlu1 %175  ;;  %v172_v36 = vpop.xlane.xlu0 %171 }
  0xa1   :  { %3048 = vst [vmem:[#allocation63_spill] sm:$0xff] %v1910_v17  ;;  %v1926_v12 = vmul.f32 0.0026041667, %v176_v57  ;;  %v1934_v16 = vmul.f32 0.0026041667, %v172_v36 }
  0xa2   :  { %v816_v57 = vld [vmem:[#allocation7] sm:$0x7] }
  0xa3   :  { %3050 = vst [vmem:[#allocation66_spill] sm:$0xff] %v1934_v16  ;;  %v1975_v21 = vmul.f32 %v1926_v12, %v1926_v12  ;;  %v1984_v44 = vmul.f32 %v1934_v16, %v1934_v16  ;;  %v2005_v48 = vperm.slane %v816_v57, 2 }
  0xa6   :  { %v1818_v19 = vpop.xlane.xlu2 %191 }
  0xa7   :  { %v1971_v37 = vmul.f32 0.0026041667, %v1818_v19 }
  0xa8   :  { %v1820_v27 = vpop.xlane.xlu1 %187  ;;  %v1822_v9 = vpop.xlane.xlu0 %183 }
  0xa9   :  { %v1980_v36 = vmul.f32 0.0026041667, %v1820_v27  ;;  %v1997_v27 = vperm.slane %v816_v57, 0 }
  0xab   :  { %3051 = vst [vmem:[#allocation67_spill] sm:$0xff] %v1980_v36 }
  0xae   :  { %v1824_v7 = vpop.xlane.xlu2 %203 }
  0xb0   :  { %v1826_v38 = vpop.xlane.xlu1 %199  ;;  %v1828_v15 = vpop.xlane.xlu0 %195 }
  0xb6   :  { %v1834_v42 = vpop.xlane.xlu2 %215 }
  0xb7   :  { %3037 = vst [vmem:[#allocation69_spill] sm:$0xff] %v1834_v42  ;;  %v1854_v42 = vmul.f32 0.0026041667, %v148_v43  ;;  %v1872_v43 = vmul.f32 %v1836_v46, %v1836_v46 }
  0xb8   :  { %v1838_v11 = vpop.xlane.xlu1 %211  ;;  %v1840_v40 = vpop.xlane.xlu0 %207 }
  0xb9   :  { %3038 = vst [vmem:[#allocation70_spill] sm:$0xff] %v1840_v40  ;;  %v1876_v40 = vmul.f32 %v1832_v31, %v1832_v31  ;;  %v1906_v4 = vmul.f32 %v1854_v42, %v1854_v42  ;;  %v3047_v31 = vld [vmem:[#allocation27_spill] sm:$0xff] }
  0xba   :  { %3040 = vst [vmem:[#allocation58_spill] sm:$0xff] %v1854_v42  ;;  %v1995_v42 = vmul.f32 0.0026041667, %v1822_v9  ;;  %v2048_v9 = vmul.f32 %v1910_v17, %v1910_v17 }
  0xbc   :  { %3053 = vst [vmem:[#allocation17_spill] sm:$0xff] %v1995_v42 }
  0xbe   :  { %v1894_v53 = vpop.xlane.xlu2 %227  ;;  %v3070_v16 = vld [vmem:[#allocation69_spill] sm:$0xff] }
  0xbf   :  { %v2085_v59 = vmul.f32 0.0026041667, %v3070_v16 }
  0xc0   :  { %v1902_v13 = vpop.xlane.xlu1 %223  ;;  %v1912_v24 = vpop.xlane.xlu0 %219  ;;  %v3067_v51 = vld [vmem:[#allocation70_spill] sm:$0xff] }
  0xc1   :  { %3049 = vst [vmem:[#allocation73_spill] sm:$0xff] %v1912_v24  ;;  %v815_v24 = vld [vmem:[#allocation5] sm:$0x7] }
  0xc2   :  { %v1986_v19 = vperm.slane %v815_v24, 0  ;;  %v1988_v6 = vperm.slane %v815_v24, 1  ;;  %v1990_v29 = vperm.slane %v815_v24, 2  ;;  %3071 = vst [vmem:[#allocation70_spill] sm:$0xff] %v2085_v59 }
  0xc6   :  { %v319_v52 = vpop.xlane.xlu2 %318 }
  0xc7   :  { %v441_v30 = vmul.f32 0.0026041667, %v319_v52  ;;  %v1999_v52 = vperm.slane %v816_v57, 1 }
  0xc8   :  { %v315_v45 = vpop.xlane.xlu1 %314  ;;  %v1992_v49 = vpop.xlane.xlu0 %235 }
  0xc9   :  { %v440_v50 = vmul.f32 0.0026041667, %v315_v45  ;;  %3052 = vst [vmem:[#allocation71_spill] sm:$0xff] %v1992_v49  ;;  %v491_v56 = vsub.f32 %v441_v30, %v466_v14  ;;  %v2013_v49 = vmul.f32 0.0026041667, %v1824_v7 }
  0xca   :  { %v2028_v7 = vmul.f32 0.0026041667, %v1826_v38 }
  0xcb   :  { %v490_v24 = vsub.f32 %v440_v50, %v1872_v43  ;;  %3054 = vst [vmem:[#allocation18_spill] sm:$0xff] %v2013_v49  ;;  %v516_v14 = vmax.f32 %v491_v56, 0.0  ;;  %v2021_v50 = vmul.f32 %v1980_v36, %v1980_v36  ;;  %v2041_v43 = vmul.f32 %v1995_v42, %v1995_v42 }
  0xcc   :  { %3056 = vst [vmem:[#allocation23_spill] sm:$0xff] %v2028_v7  ;;  %v2117_v49 = vmul.f32 %v1971_v37, %v1971_v37 }
  0xcd   :  { %v515_v57 = vmax.f32 %v490_v24, 0.0  ;;  %v2030_v56 = vadd.f32 1e-05, %v516_v14  ;;  %v2035_v24 = vmul.f32 0.0026041667, %v1828_v15  ;;  %v2078_v15 = vmul.f32 %v2028_v7, %v2028_v7 }
  0xce   :  { %v331_v55 = vpop.xlane.xlu2 %330 }
  0xcf   :  { %3058 = vst [vmem:[#allocation24_spill] sm:$0xff] %v2035_v24  ;;  %v2037_v54 = vadd.f32 1e-05, %v515_v57  ;;  %1232 = vrsqrt.f32 %v2030_v56  ;;  %v444_v38 = vmul.f32 0.0026041667, %v331_v55  ;;  %vm581_vm1 = vweird.f32 %v2030_v56 }
  0xd0   :  { %v327_v14 = vpop.xlane.xlu1 %326  ;;  %v323_v42 = vpop.xlane.xlu0 %322  ;;  %v2058_v55 = vmul.f32 0.0026041667, %v1838_v11  ;;  %v2071_v11 = vmul.f32 0.0026041667, %v3067_v51 }
  0xd1   :  { %1234 = vrsqrt.f32 %v2037_v54  ;;  %v443_v45 = vmul.f32 0.0026041667, %v327_v14  ;;  %v494_v3 = vsub.f32 %v444_v38, %v1864_v58  ;;  %v442_v17 = vmul.f32 0.0026041667, %v323_v42 }
  0xd2   :  { %v2107_v58 = vmul.f32 0.0026041667, %v1894_v53  ;;  %vm571_vm3 = vweird.f32 %v2037_v54 }
  0xd3   :  { %v493_v14 = vsub.f32 %v443_v45, %v1906_v4  ;;  %v519_v36 = vmax.f32 %v494_v3, 0.0  ;;  %v492_v42 = vsub.f32 %v442_v17, %v1876_v40  ;;  %v2082_v4 = vmul.f32 %v2035_v24, %v2035_v24  ;;  %v3077_v40 = vld [vmem:[#allocation65_spill] sm:$0xff] }
  0xd4   :  { %3078 = vst [vmem:[#allocation69_spill] sm:$0xff] %v2107_v58  ;;  %v2111_v3 = vmul.f32 0.0026041667, %v1902_v13 }
  0xd5   :  { %v518_v63 = vmax.f32 %v493_v14, 0.0  ;;  %3069 = vst [vmem:[#allocation27_spill] sm:$0xff] %v2082_v4  ;;  %v1233_v45 = vpop.eup %1232  ;;  %v2091_v38 = vadd.f32 1e-05, %v519_v36  ;;  %v517_v57 = vmax.f32 %v492_v42, 0.0 }
  0xd6   :  { %v576_v30 = vmul.f32 %v1233_v45, %v2030_v56  ;;  %v343_v18 = vpop.xlane.xlu2 %342  ;;  %vm582_vm2 = vweird.f32 %v1233_v45 }
  0xd7   :  { %v1235_v14 = vpop.eup %1234  ;;  %v2096_v24 = vadd.f32 1e-05, %v518_v63  ;;  %1236 = vrsqrt.f32 %v2091_v38  ;;  %v447_v59 = vmul.f32 0.0026041667, %v343_v18  ;;  %v2113_v4 = vadd.f32 1e-05, %v517_v57  ;;  %vm583_vm6 = vmor %vm581_vm1, %vm582_vm2 }
  0xd8   :  { %v566_v17 = vmul.f32 %v1235_v14, %v2037_v54  ;;  %v339_v36 = vpop.xlane.xlu1 %338  ;;  %v577_v63 = vmul.f32 %v1233_v45, %v576_v30  ;;  %v335_v42 = vpop.xlane.xlu0 %334  ;;  %vm572_vm4 = vweird.f32 %v1235_v14  ;;  %vm611_vm5 = vweird.f32 %v2091_v38 }
  0xd9   :  { %1238 = vrsqrt.f32 %v2096_v24  ;;  %v446_v16 = vmul.f32 0.0026041667, %v339_v36  ;;  %v445_v62 = vmul.f32 0.0026041667, %v335_v42  ;;  %v497_v30 = vsub.f32 %v447_v59, %v1944_v26  ;;  %vm573_vm8 = vmor %vm571_vm3, %vm572_vm4 }
  0xda   :  { %v567_v7 = vmul.f32 %v1235_v14, %v566_v17  ;;  %v578_v51 = vmul.f32 0.5, %v577_v63  ;;  %1240 = vrsqrt.f32 %v2113_v4  ;;  %v3082_v54 = vsub.f32 %v3041_v23, %v1836_v46 }
  0xdb   :  { %v496_v58 = vsub.f32 %v446_v16, %v1952_v8  ;;  %v495_v17 = vsub.f32 %v445_v62, %v1918_v25  ;;  %v522_v36 = vmax.f32 %v497_v30, 0.0  ;;  %v3079_v16 = vsub.f32 %v3045_v0, %v1860_v20 }
  0xdc   :  { %v568_v53 = vmul.f32 0.5, %v567_v7  ;;  %v579_v18 = vsub.f32 1.5, %v578_v51  ;;  %v3080_v30 = vsub.f32 %v3046_v61, %v1860_v20  ;;  %v3084_v0 = vsub.f32 %v1457_v10, %v1836_v46 }
  0xdd   :  { %v1237_v13 = vpop.eup %1236  ;;  %v521_v63 = vmax.f32 %v496_v58, 0.0  ;;  %v520_v26 = vmax.f32 %v495_v17, 0.0  ;;  %v2133_v58 = vadd.f32 1e-05, %v522_v36  ;;  %v3081_v17 = vsub.f32 %v3047_v31, %v1860_v20 }
  0xde   :  { %v569_v57 = vsub.f32 1.5, %v568_v53  ;;  %v580_v7 = vmul.f32 %v1233_v45, %v579_v18  ;;  %v606_v59 = vmul.f32 %v1237_v13, %v2091_v38  ;;  %vm612_vm7 = vweird.f32 %v1237_v13 }
  0xdf   :  { %v2124_v42 = vpop.eup %1238  ;;  %v2135_v51 = vadd.f32 1e-05, %v521_v63  ;;  %v3083_v63 = vsub.f32 %v3042_v28, %v1836_v46  ;;  %vm613_vm10 = vmor %vm611_vm5, %vm612_vm7  ;;  %1242 = vrsqrt.f32 %v2133_v58  ;;  %vm601_vm11 = vweird.f32 %v2096_v24 }
  0xe0   :  { %v570_v62 = vmul.f32 %v1235_v14, %v569_v57  ;;  %v596_v8 = vmul.f32 %v2124_v42, %v2096_v24  ;;  %v584_v25 = vsel %vm583_vm6, %v1233_v45, %v580_v7  ;;  %v607_v56 = vmul.f32 %v1237_v13, %v606_v59 }
  0xe1   :  { %v895_v53 = vmul.f32 %v3079_v16, %v584_v25  ;;  %v896_v18 = vmul.f32 %v3080_v30, %v584_v25  ;;  %v897_v45 = vmul.f32 %v3081_v17, %v584_v25  ;;  %vm602_vm9 = vweird.f32 %v2124_v42 }
  0xe2   :  { %v574_v57 = vsel %vm573_vm8, %v1235_v14, %v570_v62  ;;  %v608_v16 = vmul.f32 0.5, %v607_v56  ;;  %v597_v31 = vmul.f32 %v2124_v42, %v596_v8  ;;  %v2159_v14 = vpop.eup %1240  ;;  %v2169_v8 = vadd.f32 1e-05, %v520_v26  ;;  %v3085_v26 = vld [vmem:[#allocation12_spill] sm:$0xff]  ;;  %vm603_vm12 = vmor %vm601_vm11, %vm602_vm9 }
  0xe3   :  { %v892_v36 = vmul.f32 %v3082_v54, %v574_v57  ;;  %v893_v7 = vmul.f32 %v3083_v63, %v574_v57  ;;  %v894_v59 = vmul.f32 %v3084_v0, %v574_v57  ;;  %v977_v61 = vmul.f32 %v1986_v19, %v895_v53 }
  0xe4   :  { %v978_v30 = vmul.f32 %v1988_v6, %v896_v18  ;;  %v979_v20 = vmul.f32 %v1990_v29, %v897_v45  ;;  %v609_v25 = vsub.f32 1.5, %v608_v16  ;;  %v598_v53 = vmul.f32 0.5, %v597_v31 }
  0xe5   :  { %v974_v23 = vmul.f32 %v1986_v19, %v892_v36  ;;  %v975_v28 = vmul.f32 %v1988_v6, %v893_v7  ;;  %v976_v62 = vmul.f32 %v1990_v29, %v894_v59  ;;  %v1059_v10 = vadd.f32 %v1997_v27, %v977_v61  ;;  %v355_v36 = vpop.xlane.xlu2 %354  ;;  %v3088_v61 = vld [vmem:[#allocation13_spill] sm:$0xff] }
  0xe6   :  { %v1060_v46 = vadd.f32 %v1999_v52, %v978_v30  ;;  %v1061_v56 = vadd.f32 %v2005_v48, %v979_v20  ;;  %v610_v17 = vmul.f32 %v1237_v13, %v609_v25  ;;  %v599_v57 = vsub.f32 1.5, %v598_v53  ;;  %v3091_v25 = vld [vmem:[#allocation58_spill] sm:$0xff] }
  0xe7   :  { %v1056_v18 = vadd.f32 %v1997_v27, %v974_v23  ;;  %1134 = vst [vmem:[#allocation8 + $0x18] sm:$0xff] %v1059_v10  ;;  %v1057_v45 = vadd.f32 %v1999_v52, %v975_v28  ;;  %v586_v54 = vmul.f32 %v2159_v14, %v2113_v4  ;;  %v1058_v63 = vadd.f32 %v2005_v48, %v976_v62  ;;  %v3090_v62 = vld [vmem:[#allocation21_spill] sm:$0xff] }
  0xe8   :  { %1135 = vst [vmem:[#allocation8 + $0x20] sm:$0xff] %v1060_v46  ;;  %v614_v7 = vsel %vm613_vm10, %v1237_v13, %v610_v17  ;;  %1244 = vrsqrt.f32 %v2135_v51  ;;  %v3086_v38 = vsub.f32 %v3085_v26, %v1830_v60  ;;  %v3087_v59 = vsub.f32 %v1439_v1, %v1830_v60  ;;  %v3095_v17 = vld [vmem:[#allocation26_spill] sm:$0xff] }
  0xe9   :  { %1136 = vst [vmem:[#allocation8 + $0x28] sm:$0xff] %v1061_v56  ;;  %v3089_v30 = vsub.f32 %v3088_v61, %v1830_v60  ;;  %v600_v31 = vmul.f32 %v2124_v42, %v599_v57  ;;  %v587_v24 = vmul.f32 %v2159_v14, %v586_v54  ;;  %vm592_vm13 = vweird.f32 %v2159_v14  ;;  %v3093_v56 = vld [vmem:[#allocation22_spill] sm:$0xff] }
  0xea   :  { %v904_v0 = vmul.f32 %v3086_v38, %v614_v7  ;;  %v905_v16 = vmul.f32 %v3087_v59, %v614_v7  ;;  %1131 = vst [vmem:[#allocation8] sm:$0xff] %v1056_v18  ;;  %1246 = vrsqrt.f32 %v2169_v8  ;;  %v450_v13 = vmul.f32 0.0026041667, %v355_v36  ;;  %v2209_v36 = vpop.eup %1242 }
  0xeb   :  { %v906_v20 = vmul.f32 %v3089_v30, %v614_v7  ;;  %1132 = vst [vmem:[#allocation8 + $0x8] sm:$0xff] %v1057_v45  ;;  %v604_v28 = vsel %vm603_vm12, %v2124_v42, %v600_v31  ;;  %v3092_v10 = vsub.f32 %v3090_v62, %v3091_v25  ;;  %v3094_v53 = vsub.f32 %v3093_v56, %v3091_v25  ;;  %v347_v31 = vpop.xlane.xlu0 %346 }
  0xec   :  { %v986_v1 = vmul.f32 %v1986_v19, %v904_v0  ;;  %v987_v23 = vmul.f32 %v1988_v6, %v905_v16  ;;  %1133 = vst [vmem:[#allocation8 + $0x10] sm:$0xff] %v1058_v63  ;;  %v3096_v45 = vsub.f32 %v3095_v17, %v3091_v25  ;;  %v588_v54 = vmul.f32 0.5, %v587_v24 }
  0xed   :  { %v988_v60 = vmul.f32 %v1990_v29, %v906_v20  ;;  %v901_v46 = vmul.f32 %v3092_v10, %v604_v28  ;;  %v902_v18 = vmul.f32 %v3094_v53, %v604_v28  ;;  %v500_v26 = vsub.f32 %v450_v13, %v1975_v21  ;;  %v351_v20 = vpop.xlane.xlu1 %350  ;;  %v3097_v53 = vld [vmem:[#allocation14_spill] sm:$0xff] }
  0xee   :  { %v903_v57 = vmul.f32 %v3096_v45, %v604_v28  ;;  %v1068_v7 = vadd.f32 %v1997_v27, %v986_v1  ;;  %v1069_v42 = vadd.f32 %v1999_v52, %v987_v23  ;;  %v2215_v38 = vpop.eup %1244  ;;  %v589_v61 = vsub.f32 1.5, %v588_v54 }
  0xef   :  { %v1070_v63 = vadd.f32 %v2005_v48, %v988_v60  ;;  %v983_v0 = vmul.f32 %v1986_v19, %v901_v46  ;;  %v984_v59 = vmul.f32 %v1988_v6, %v902_v18  ;;  %vm591_vm14 = vweird.f32 %v2113_v4  ;;  %v3098_v18 = vld [vmem:[#allocation68_spill] sm:$0xff] }
  0xf0   :  { %v985_v16 = vmul.f32 %v1990_v29, %v903_v57  ;;  %1143 = vst [vmem:[#allocation8 + $0x60] sm:$0xff] %v1068_v7  ;;  %v636_v30 = vmul.f32 %v2209_v36, %v2133_v58  ;;  %vm641_vm15 = vweird.f32 %v2133_v58  ;;  %v626_v21 = vmul.f32 %v2215_v38, %v2135_v51  ;;  %v2226_v24 = vpop.eup %1246  ;;  %vm593_vm1 = vmor %vm591_vm14, %vm592_vm13  ;;  %v3100_v57 = vld [vmem:[#allocation15_spill] sm:$0xff] }
  0xf1   :  { %1144 = vst [vmem:[#allocation8 + $0x68] sm:$0xff] %v1069_v42  ;;  %v1065_v13 = vadd.f32 %v1997_v27, %v983_v0  ;;  %v1066_v1 = vadd.f32 %v1999_v52, %v984_v59  ;;  %v590_v4 = vmul.f32 %v2159_v14, %v589_v61  ;;  %vm631_vm0 = vweird.f32 %v2135_v51  ;;  %v3102_v42 = vld [vmem:[#allocation16_spill] sm:$0xff] }
  0xf2   :  { %v1067_v23 = vadd.f32 %v2005_v48, %v985_v16  ;;  %1145 = vst [vmem:[#allocation8 + $0x70] sm:$0xff] %v1070_v63  ;;  %v637_v60 = vmul.f32 %v2209_v36, %v636_v30  ;;  %vm642_vm2 = vweird.f32 %v2209_v36  ;;  %v627_v28 = vmul.f32 %v2215_v38, %v626_v21 }
  0xf3   :  { %v616_v62 = vmul.f32 %v2226_v24, %v2169_v8  ;;  %1140 = vst [vmem:[#allocation8 + $0x48] sm:$0xff] %v1065_v13  ;;  %v594_v25 = vsel %vm593_vm1, %v2159_v14, %v590_v4  ;;  %v525_v10 = vmax.f32 %v500_v26, 0.0  ;;  %v449_v46 = vmul.f32 0.0026041667, %v351_v20  ;;  %vm643_vm4 = vmor %vm641_vm15, %vm642_vm2 }
  0xf4   :  { %v2241_v56 = vmul.f32 0.0026041667, %v347_v31  ;;  %1141 = vst [vmem:[#allocation8 + $0x50] sm:$0xff] %v1066_v1  ;;  %v3099_v17 = vsub.f32 %v3097_v53, %v3098_v18  ;;  %v3101_v54 = vsub.f32 %v3100_v57, %v3098_v18  ;;  %v3103_v63 = vsub.f32 %v3102_v42, %v3098_v18 }
  0xf5   :  { %v638_v59 = vmul.f32 0.5, %v637_v60  ;;  %1142 = vst [vmem:[#allocation8 + $0x58] sm:$0xff] %v1067_v23  ;;  %v628_v14 = vmul.f32 0.5, %v627_v28  ;;  %v617_v26 = vmul.f32 %v2226_v24, %v616_v62  ;;  %v2253_v16 = vadd.f32 1e-05, %v525_v10  ;;  %v367_v23 = vpop.xlane.xlu2 %366 }
  0xf6   :  { %v898_v45 = vmul.f32 %v3099_v17, %v594_v25  ;;  %v899_v7 = vmul.f32 %v3101_v54, %v594_v25  ;;  %v900_v0 = vmul.f32 %v3103_v63, %v594_v25  ;;  %v499_v61 = vsub.f32 %v449_v46, %v1984_v44 }
  0xf7   :  { %v639_v31 = vsub.f32 1.5, %v638_v59  ;;  %v629_v13 = vsub.f32 1.5, %v628_v14  ;;  %vm632_vm3 = vweird.f32 %v2215_v38  ;;  %v618_v1 = vmul.f32 0.5, %v617_v26 }
  0xf8   :  { %v980_v30 = vmul.f32 %v1986_v19, %v898_v45  ;;  %v981_v21 = vmul.f32 %v1988_v6, %v899_v7  ;;  %v982_v20 = vmul.f32 %v1990_v29, %v900_v0  ;;  %1248 = vrsqrt.f32 %v2253_v16  ;;  %vm633_vm6 = vmor %vm631_vm0, %vm632_vm3  ;;  %v363_v0 = vpop.xlane.xlu1 %362 }
  0xf9   :  { %v640_v28 = vmul.f32 %v2209_v36, %v639_v31  ;;  %v630_v62 = vmul.f32 %v2215_v38, %v629_v13  ;;  %v619_v25 = vsub.f32 1.5, %v618_v1  ;;  %vm621_vm5 = vweird.f32 %v2169_v8  ;;  %v3113_v13 = vld [vmem:[#allocation73_spill] sm:$0xff] }
  0xfa   :  { %v1062_v4 = vadd.f32 %v1997_v27, %v980_v30  ;;  %v1063_v60 = vadd.f32 %v1999_v52, %v981_v21  ;;  %v1064_v44 = vadd.f32 %v2005_v48, %v982_v20  ;;  %v524_v10 = vmax.f32 %v499_v61, 0.0  ;;  %v3110_v21 = vld [vmem:[#allocation19_spill] sm:$0xff]  ;;  %v3111_v20 = vld [vmem:[#allocation57_spill] sm:$0xff] }
  0xfb   :  { %v644_v46 = vsel %vm643_vm4, %v2209_v36, %v640_v28  ;;  %vm622_vm7 = vweird.f32 %v2226_v24  ;;  %v498_v58 = vsub.f32 %v2241_v56, %v1956_v5  ;;  %v453_v53 = vmul.f32 0.0026041667, %v367_v23  ;;  %v359_v28 = vpop.xlane.xlu0 %358 }
  0xfc   :  { %1137 = vst [vmem:[#allocation8 + $0x30] sm:$0xff] %v1062_v4  ;;  %v3104_v18 = vsub.f32 %v1495_v32, %v1892_v2  ;;  %v3105_v45 = vsub.f32 %v1497_v33, %v1892_v2  ;;  %v3106_v57 = vsub.f32 %v1509_v39, %v1892_v2  ;;  %v634_v54 = vsel %vm633_vm6, %v2215_v38, %v630_v62  ;;  %vm623_vm8 = vmor %vm621_vm5, %vm622_vm7  ;;  %v3114_v4 = vld [vmem:[#allocation20_spill] sm:$0xff] }
  0xfd   :  { %1138 = vst [vmem:[#allocation8 + $0x38] sm:$0xff] %v1063_v60  ;;  %v3107_v5 = vsub.f32 %v1499_v34, %v1900_v22  ;;  %v3108_v7 = vsub.f32 %v1501_v35, %v1900_v22  ;;  %v3109_v42 = vsub.f32 %v1513_v41, %v1900_v22  ;;  %v620_v63 = vmul.f32 %v2226_v24, %v619_v25  ;;  %v3116_v25 = vld [vmem:[#allocation25_spill] sm:$0xff] }
  0xfe   :  { %v913_v17 = vmul.f32 %v3104_v18, %v644_v46  ;;  %v914_v36 = vmul.f32 %v3105_v45, %v644_v46  ;;  %v915_v51 = vmul.f32 %v3106_v57, %v644_v46  ;;  %1139 = vst [vmem:[#allocation8 + $0x40] sm:$0xff] %v1064_v44  ;;  %v2299_v2 = vpop.eup %1248  ;;  %v2308_v35 = vadd.f32 1e-05, %v524_v10 }
  0xff   :  { %v910_v56 = vmul.f32 %v3107_v5, %v634_v54  ;;  %v911_v32 = vmul.f32 %v3108_v7, %v634_v54  ;;  %v912_v33 = vmul.f32 %v3109_v42, %v634_v54  ;;  %v624_v14 = vsel %vm623_vm8, %v2226_v24, %v620_v63 }
 0x100   :  { %v995_v39 = vmul.f32 %v1986_v19, %v913_v17  ;;  %v996_v38 = vmul.f32 %v1988_v6, %v914_v36  ;;  %v997_v34 = vmul.f32 %v1990_v29, %v915_v51  ;;  %v3112_v8 = vsub.f32 %v3110_v21, %v3111_v20  ;;  %v379_v51 = vpop.xlane.xlu2 %378 }
 0x101   :  { %v992_v22 = vmul.f32 %v1986_v19, %v910_v56  ;;  %v993_v41 = vmul.f32 %v1988_v6, %v911_v32  ;;  %v994_v59 = vmul.f32 %v1990_v29, %v912_v33  ;;  %v2321_v1 = vmul.f32 0.0026041667, %v3113_v13 }
 0x102   :  { %v1077_v26 = vadd.f32 %v1997_v27, %v995_v39  ;;  %v1078_v61 = vadd.f32 %v1999_v52, %v996_v38  ;;  %v1079_v30 = vadd.f32 %v2005_v48, %v997_v34  ;;  %v907_v31 = vmul.f32 %v3112_v8, %v624_v14  ;;  %v2346_v34 = vld [vmem:[#allocation2 + $0x210] sm:$0xff] }
 0x103   :  { %v1074_v23 = vadd.f32 %v1997_v27, %v992_v22  ;;  %v3115_v60 = vsub.f32 %v3114_v4, %v3111_v20  ;;  %v452_v24 = vmul.f32 0.0026041667, %v363_v0  ;;  %v1075_v62 = vadd.f32 %v1999_v52, %v993_v41  ;;  %v375_v41 = vpop.xlane.xlu1 %374  ;;  %v371_v13 = vpop.xlane.xlu0 %370 }
 0x104   :  { %1152 = vst [vmem:[#allocation8 + $0xa8] sm:$0xff] %v1077_v26  ;;  %v3117_v10 = vsub.f32 %v3116_v25, %v3111_v20  ;;  %v989_v18 = vmul.f32 %v1986_v19, %v907_v31  ;;  %v666_v17 = vmul.f32 %v2299_v2, %v2253_v16  ;;  %v1076_v45 = vadd.f32 %v2005_v48, %v994_v59  ;;  %v3119_v25 = vld [vmem:[#allocation33_spill] sm:$0xff] }
 0x105   :  { %v908_v44 = vmul.f32 %v3115_v60, %v624_v14  ;;  %1153 = vst [vmem:[#allocation8 + $0xb0] sm:$0xff] %v1078_v61  ;;  %1250 = vrsqrt.f32 %v2308_v35  ;;  %v523_v57 = vmax.f32 %v498_v58, 0.0  ;;  %v503_v7 = vsub.f32 %v453_v53, %v2021_v50  ;;  %v2356_v61 = vld [vmem:[#allocation2 + $0x218] sm:$0xff] }
 0x106   :  { %v909_v46 = vmul.f32 %v3117_v10, %v624_v14  ;;  %1154 = vst [vmem:[#allocation8 + $0xb8] sm:$0xff] %v1079_v30  ;;  %v1071_v5 = vadd.f32 %v1997_v27, %v989_v18  ;;  %v667_v56 = vmul.f32 %v2299_v2, %v666_v17  ;;  %v502_v33 = vsub.f32 %v452_v24, %v2041_v43  ;;  %v3121_v18 = vld [vmem:[#allocation37_spill] sm:$0xff] }
 0x107   :  { %v990_v36 = vmul.f32 %v1988_v6, %v908_v44  ;;  %1149 = vst [vmem:[#allocation8 + $0x90] sm:$0xff] %v1074_v23  ;;  %v2342_v42 = vadd.f32 1e-05, %v523_v57  ;;  %v451_v63 = vmul.f32 0.0026041667, %v359_v28  ;;  %v528_v39 = vmax.f32 %v503_v7, 0.0 }
 0x108   :  { %v991_v54 = vmul.f32 %v1990_v29, %v909_v46  ;;  %1150 = vst [vmem:[#allocation8 + $0x98] sm:$0xff] %v1075_v62  ;;  %v668_v0 = vmul.f32 0.5, %v667_v56  ;;  %v456_v38 = vmul.f32 0.0026041667, %v379_v51  ;;  %v883_v22 = vsub.f32 %v2346_v34, %v2111_v3  ;;  %v3123_v57 = vld [vmem:[#allocation27_spill] sm:$0xff] }
 0x109   :  { %v1072_v32 = vadd.f32 %v1999_v52, %v990_v36  ;;  %1151 = vst [vmem:[#allocation8 + $0xa0] sm:$0xff] %v1076_v45  ;;  %1252 = vrsqrt.f32 %v2342_v42  ;;  %v527_v50 = vmax.f32 %v502_v33, 0.0  ;;  %v501_v53 = vsub.f32 %v451_v63, %v2048_v9 }
 0x10a   :  { %v1073_v58 = vadd.f32 %v2005_v48, %v991_v54  ;;  %1146 = vst [vmem:[#allocation8 + $0x78] sm:$0xff] %v1071_v5  ;;  %v669_v43 = vsub.f32 1.5, %v668_v0  ;;  %vm672_vm9 = vweird.f32 %v2299_v2  ;;  %v2353_v59 = vadd.f32 1e-05, %v528_v39 }
 0x10b   :  { %v506_v14 = vsub.f32 %v456_v38, %v2078_v15  ;;  %v1251_v26 = vpop.eup %1250  ;;  %v884_v30 = vsub.f32 %v2356_v61, %v2111_v3  ;;  %1147 = vst [vmem:[#allocation8 + $0x80] sm:$0xff] %v1072_v32  ;;  %vm671_vm10 = vweird.f32 %v2253_v16  ;;  %v2361_v21 = vadd.f32 1e-05, %v527_v50 }
 0x10c   :  { %v526_v9 = vmax.f32 %v501_v53, 0.0  ;;  %1148 = vst [vmem:[#allocation8 + $0x88] sm:$0xff] %v1073_v58  ;;  %v670_v20 = vmul.f32 %v2299_v2, %v669_v43  ;;  %v656_v8 = vmul.f32 %v1251_v26, %v2308_v35  ;;  %1254 = vrsqrt.f32 %v2353_v59  ;;  %vm673_vm11 = vmor %vm671_vm10, %vm672_vm9 }
 0x10d   :  { %v455_v15 = vmul.f32 0.0026041667, %v375_v41  ;;  %1256 = vrsqrt.f32 %v2361_v21  ;;  %v2373_v16 = vmul.f32 %v2058_v55, %v2058_v55  ;;  %v2377_v23 = vmul.f32 %v2071_v11, %v2071_v11 }
 0x10e   :  { %v2369_v31 = vadd.f32 1e-05, %v526_v9  ;;  %v674_v4 = vsel %vm673_vm11, %v2299_v2, %v670_v20  ;;  %v657_v60 = vmul.f32 %v1251_v26, %v656_v8  ;;  %vm661_vm12 = vweird.f32 %v2308_v35  ;;  %v3124_v35 = vld [vmem:[#allocation34_spill] sm:$0xff] }
 0x10f   :  { %v531_v44 = vmax.f32 %v506_v14, 0.0  ;;  %v1253_v24 = vpop.eup %1252  ;;  %v3118_v28 = vsub.f32 %v1522_v47, %v1926_v12  ;;  %v3120_v10 = vsub.f32 %v3119_v25, %v1926_v12  ;;  %v3122_v17 = vsub.f32 %v3121_v18, %v1926_v12 }
 0x110   :  { %1258 = vrsqrt.f32 %v2369_v31  ;;  %v658_v2 = vmul.f32 0.5, %v657_v60  ;;  %v646_v36 = vmul.f32 %v1253_v24, %v2342_v42  ;;  %vm651_vm13 = vweird.f32 %v2342_v42  ;;  %v3125_v60 = vld [vmem:[#allocation66_spill] sm:$0xff] }
 0x111   :  { %v922_v62 = vmul.f32 %v3118_v28, %v674_v4  ;;  %v923_v46 = vmul.f32 %v3120_v10, %v674_v4  ;;  %v924_v45 = vmul.f32 %v3122_v17, %v674_v4  ;;  %v505_v51 = vsub.f32 %v455_v15, %v3123_v57 }
 0x112   :  { %v2394_v54 = vmul.f32 0.0026041667, %v371_v13  ;;  %v2399_v7 = vadd.f32 1e-05, %v531_v44  ;;  %v2401_v12 = vpop.eup %1254  ;;  %v659_v32 = vsub.f32 1.5, %v658_v2  ;;  %vm662_vm14 = vweird.f32 %v1251_v26 }
 0x113   :  { %v1004_v47 = vmul.f32 %v1986_v19, %v922_v62  ;;  %v1005_v5 = vmul.f32 %v1988_v6, %v923_v46  ;;  %v1006_v56 = vmul.f32 %v1990_v29, %v924_v45  ;;  %v647_v33 = vmul.f32 %v1253_v24, %v646_v36  ;;  %v2403_v63 = vpop.eup %1256  ;;  %vm663_vm2 = vmor %vm661_vm12, %vm662_vm14  ;;  %v3127_v62 = vld [vmem:[#allocation35_spill] sm:$0xff]  ;;  %v3129_v46 = vld [vmem:[#allocation38_spill] sm:$0xff] }
 0x114   :  { %vm652_vm15 = vweird.f32 %v1253_v24  ;;  %v696_v38 = vmul.f32 %v2401_v12, %v2353_v59  ;;  %vm701_vm0 = vweird.f32 %v2353_v59  ;;  %v660_v50 = vmul.f32 %v1251_v26, %v659_v32 }
 0x115   :  { %v1086_v58 = vadd.f32 %v1997_v27, %v1004_v47  ;;  %v1087_v0 = vadd.f32 %v1999_v52, %v1005_v5  ;;  %v1088_v39 = vadd.f32 %v2005_v48, %v1006_v56  ;;  %v648_v53 = vmul.f32 0.5, %v647_v33  ;;  %vm653_vm5 = vmor %vm651_vm13, %vm652_vm15 }
 0x116   :  { %v686_v41 = vmul.f32 %v2403_v63, %v2361_v21  ;;  %vm691_vm1 = vweird.f32 %v2361_v21  ;;  %v530_v43 = vmax.f32 %v505_v51, 0.0  ;;  %v2414_v14 = vpop.eup %1258  ;;  %v697_v9 = vmul.f32 %v2401_v12, %v696_v38  ;;  %v3138_v21 = vld [vmem:[#allocation41_spill] sm:$0xff] }
 0x117   :  { %1161 = vst [vmem:[#allocation8 + $0xf0] sm:$0xff] %v1086_v58  ;;  %vm702_vm3 = vweird.f32 %v2401_v12  ;;  %1260 = vrsqrt.f32 %v2399_v7  ;;  %v504_v20 = vsub.f32 %v2394_v54, %v2117_v49  ;;  %v664_v8 = vsel %vm663_vm2, %v1251_v26, %v660_v50  ;;  %v3131_v50 = vld [vmem:[#allocation28_spill] sm:$0xff] }
 0x118   :  { %1162 = vst [vmem:[#allocation8 + $0xf8] sm:$0xff] %v1087_v0  ;;  %v649_v15 = vsub.f32 1.5, %v648_v53  ;;  %v687_v13 = vmul.f32 %v2403_v63, %v686_v41  ;;  %v676_v4 = vmul.f32 %v2414_v14, %v2369_v31  ;;  %v3126_v44 = vsub.f32 %v3124_v35, %v3125_v60  ;;  %v3132_v53 = vld [vmem:[#allocation72_spill] sm:$0xff]  ;;  %vm703_vm8 = vmor %vm701_vm0, %vm702_vm3 }
 0x119   :  { %1163 = vst [vmem:[#allocation8 + $0x100] sm:$0xff] %v1088_v39  ;;  %v3128_v25 = vsub.f32 %v3127_v62, %v3125_v60  ;;  %v3130_v18 = vsub.f32 %v3129_v46, %v3125_v60  ;;  %v698_v26 = vmul.f32 0.5, %v697_v9  ;;  %vm692_vm4 = vweird.f32 %v2403_v63  ;;  %v3134_v9 = vld [vmem:[#allocation29_spill] sm:$0xff] }
 0x11a   :  { %v919_v28 = vmul.f32 %v3126_v44, %v664_v8  ;;  %v650_v45 = vmul.f32 %v1253_v24, %v649_v15  ;;  %v688_v2 = vmul.f32 0.5, %v687_v13  ;;  %v677_v36 = vmul.f32 %v2414_v14, %v676_v4  ;;  %v3136_v15 = vld [vmem:[#allocation30_spill] sm:$0xff]  ;;  %v387_v44 = vpop.xlane.xlu1 %386  ;;  %vm693_vm9 = vmor %vm691_vm1, %vm692_vm4 }
 0x11b   :  { %v920_v10 = vmul.f32 %v3128_v25, %v664_v8  ;;  %v921_v17 = vmul.f32 %v3130_v18, %v664_v8  ;;  %v699_v5 = vsub.f32 1.5, %v698_v26  ;;  %vm681_vm6 = vweird.f32 %v2369_v31  ;;  %v3157_v31 = vld [vmem:[#allocation36_spill] sm:$0xff] }
 0x11c   :  { %v1001_v57 = vmul.f32 %v1986_v19, %v919_v28  ;;  %v654_v56 = vsel %vm653_vm5, %v1253_v24, %v650_v45  ;;  %v689_v32 = vsub.f32 1.5, %v688_v2  ;;  %v678_v33 = vmul.f32 0.5, %v677_v36  ;;  %v3139_v45 = vld [vmem:[#allocation67_spill] sm:$0xff] }
 0x11d   :  { %v1002_v51 = vmul.f32 %v1988_v6, %v920_v10  ;;  %v1003_v47 = vmul.f32 %v1990_v29, %v921_v17  ;;  %vm682_vm7 = vweird.f32 %v2414_v14  ;;  %v2446_v58 = vpop.eup %1260  ;;  %v3133_v42 = vsub.f32 %v3131_v50, %v3132_v53 }
 0x11e   :  { %v1083_v0 = vadd.f32 %v1997_v27, %v1001_v57  ;;  %v3135_v24 = vsub.f32 %v3134_v9, %v3132_v53  ;;  %v3137_v13 = vsub.f32 %v3136_v15, %v3132_v53  ;;  %v700_v35 = vmul.f32 %v2401_v12, %v699_v5  ;;  %v3141_v57 = vld [vmem:[#allocation42_spill] sm:$0xff]  ;;  %vm683_vm10 = vmor %vm681_vm6, %vm682_vm7 }
 0x11f   :  { %v1084_v39 = vadd.f32 %v1999_v52, %v1002_v51  ;;  %v1085_v38 = vadd.f32 %v2005_v48, %v1003_v47  ;;  %v916_v41 = vmul.f32 %v3133_v42, %v654_v56  ;;  %v690_v60 = vmul.f32 %v2403_v63, %v689_v32  ;;  %v3143_v47 = vld [vmem:[#allocation46_spill] sm:$0xff] }
 0x120   :  { %v917_v8 = vmul.f32 %v3135_v24, %v654_v56  ;;  %v918_v4 = vmul.f32 %v3137_v13, %v654_v56  ;;  %1158 = vst [vmem:[#allocation8 + $0xd8] sm:$0xff] %v1083_v0  ;;  %v679_v62 = vsub.f32 1.5, %v678_v33  ;;  %v726_v25 = vmul.f32 %v2446_v58, %v2399_v7  ;;  %v3146_v33 = vld [vmem:[#allocation17_spill] sm:$0xff]  ;;  %v3150_v24 = vld [vmem:[#allocation47_spill] sm:$0xff]  ;;  %v391_v13 = vpop.xlane.xlu2 %390 }
 0x121   :  { %v998_v28 = vmul.f32 %v1986_v19, %v916_v41  ;;  %v2473_v10 = vadd.f32 1e-05, %v530_v43  ;;  %1159 = vst [vmem:[#allocation8 + $0xe0] sm:$0xff] %v1084_v39  ;;  %v704_v18 = vsel %vm703_vm8, %v2401_v12, %v700_v35  ;;  %v694_v17 = vsel %vm693_vm9, %v2403_v63, %v690_v60  ;;  %v3145_v63 = vld [vmem:[#allocation43_spill] sm:$0xff] }
 0x122   :  { %v999_v59 = vmul.f32 %v1988_v6, %v917_v8  ;;  %v1000_v46 = vmul.f32 %v1990_v29, %v918_v4  ;;  %1160 = vst [vmem:[#allocation8 + $0xe8] sm:$0xff] %v1085_v38  ;;  %v3140_v2 = vsub.f32 %v3138_v21, %v3139_v45  ;;  %v3142_v43 = vsub.f32 %v3141_v57, %v3139_v45  ;;  %v3148_v38 = vld [vmem:[#allocation44_spill] sm:$0xff] }
 0x123   :  { %v1080_v26 = vadd.f32 %v1997_v27, %v998_v28  ;;  %v3144_v5 = vsub.f32 %v3143_v47, %v3139_v45  ;;  %v3147_v0 = vsub.f32 %v3145_v63, %v3146_v33  ;;  %v3149_v50 = vsub.f32 %v3148_v38, %v3146_v33 }
 0x124   :  { %v931_v36 = vmul.f32 %v3140_v2, %v704_v18  ;;  %v932_v51 = vmul.f32 %v3142_v43, %v704_v18  ;;  %v1081_v32 = vadd.f32 %v1999_v52, %v999_v59  ;;  %v1082_v12 = vadd.f32 %v2005_v48, %v1000_v46  ;;  %v383_v59 = vpop.xlane.xlu0 %382  ;;  %v3152_v2 = vld [vmem:[#allocation31_spill] sm:$0xff] }
 0x125   :  { %v933_v56 = vmul.f32 %v3144_v5, %v704_v18  ;;  %v928_v39 = vmul.f32 %v3147_v0, %v694_v17  ;;  %v929_v53 = vmul.f32 %v3149_v50, %v694_v17  ;;  %1155 = vst [vmem:[#allocation8 + $0xc0] sm:$0xff] %v1080_v26  ;;  %v3151_v8 = vsub.f32 %v3150_v24, %v3146_v33  ;;  %v2533_v33 = vpop.xlane.xlu1 %398  ;;  %v2548_v24 = vld [vmem:[#allocation2 + $0x220] sm:$0xff] }
 0x126   :  { %v1013_v42 = vmul.f32 %v1986_v19, %v931_v36  ;;  %v1014_v41 = vmul.f32 %v1988_v6, %v932_v51  ;;  %1156 = vst [vmem:[#allocation8 + $0xc8] sm:$0xff] %v1081_v32  ;;  %v680_v60 = vmul.f32 %v2414_v14, %v679_v62  ;;  %v727_v28 = vmul.f32 %v2446_v58, %v726_v25  ;;  %v3153_v36 = vld [vmem:[#allocation63_spill] sm:$0xff]  ;;  %v3155_v51 = vld [vmem:[#allocation32_spill] sm:$0xff] }
 0x127   :  { %v1015_v9 = vmul.f32 %v1990_v29, %v933_v56  ;;  %v930_v15 = vmul.f32 %v3151_v8, %v694_v17  ;;  %v1010_v4 = vmul.f32 %v1986_v19, %v928_v39  ;;  %v1011_v35 = vmul.f32 %v1988_v6, %v929_v53  ;;  %1157 = vst [vmem:[#allocation8 + $0xd0] sm:$0xff] %v1082_v12 }
 0x128   :  { %v1095_v46 = vadd.f32 %v1997_v27, %v1013_v42  ;;  %v1096_v18 = vadd.f32 %v1999_v52, %v1014_v41  ;;  %v684_v62 = vsel %vm683_vm10, %v2414_v14, %v680_v60  ;;  %v728_v25 = vmul.f32 0.5, %v727_v28  ;;  %v3162_v60 = vld [vmem:[#allocation51_spill] sm:$0xff] }
 0x129   :  { %v1097_v26 = vadd.f32 %v2005_v48, %v1015_v9  ;;  %v1012_v17 = vmul.f32 %v1990_v29, %v930_v15  ;;  %v1092_v21 = vadd.f32 %v1997_v27, %v1010_v4  ;;  %vm732_vm11 = vweird.f32 %v2446_v58  ;;  %v3159_v15 = vld [vmem:[#allocation50_spill] sm:$0xff] }
 0x12a   :  { %1170 = vst [vmem:[#allocation8 + $0x138] sm:$0xff] %v1095_v46  ;;  %v1093_v45 = vadd.f32 %v1999_v52, %v1011_v35  ;;  %v3154_v57 = vsub.f32 %v3152_v2, %v3153_v36  ;;  %v3156_v47 = vsub.f32 %v3155_v51, %v3153_v36  ;;  %v3158_v56 = vsub.f32 %v3157_v31, %v3153_v36  ;;  %v3164_v46 = vld [vmem:[#allocation55_spill] sm:$0xff] }
 0x12b   :  { %1171 = vst [vmem:[#allocation8 + $0x140] sm:$0xff] %v1096_v18  ;;  %v1094_v14 = vadd.f32 %v2005_v48, %v1012_v17  ;;  %v729_v12 = vsub.f32 1.5, %v728_v25  ;;  %1262 = vrsqrt.f32 %v2473_v10  ;;  %v529_v63 = vmax.f32 %v504_v20, 0.0 }
 0x12c   :  { %v925_v43 = vmul.f32 %v3154_v57, %v684_v62  ;;  %v926_v5 = vmul.f32 %v3156_v47, %v684_v62  ;;  %v927_v32 = vmul.f32 %v3158_v56, %v684_v62  ;;  %1172 = vst [vmem:[#allocation8 + $0x148] sm:$0xff] %v1097_v26  ;;  %v459_v50 = vmul.f32 0.0026041667, %v391_v13  ;;  %v3160_v13 = vld [vmem:[#allocation23_spill] sm:$0xff]  ;;  %v395_v57 = vpop.xlane.xlu0 %394 }
 0x12d   :  { %1167 = vst [vmem:[#allocation8 + $0x120] sm:$0xff] %v1092_v21  ;;  %v730_v53 = vmul.f32 %v2446_v58, %v729_v12  ;;  %vm731_vm12 = vweird.f32 %v2399_v7  ;;  %v2540_v42 = vadd.f32 1e-05, %v529_v63  ;;  %v458_v41 = vmul.f32 0.0026041667, %v387_v44  ;;  %v403_v21 = vpop.xlane.xlu2 %402  ;;  %v3166_v62 = vld [vmem:[#allocation71_spill] sm:$0xff] }
 0x12e   :  { %v1007_v0 = vmul.f32 %v1986_v19, %v925_v43  ;;  %v1008_v39 = vmul.f32 %v1988_v6, %v926_v5  ;;  %v1009_v38 = vmul.f32 %v1990_v29, %v927_v32  ;;  %1168 = vst [vmem:[#allocation8 + $0x128] sm:$0xff] %v1093_v45  ;;  %vm733_vm13 = vmor %vm731_vm12, %vm732_vm11  ;;  %v509_v9 = vsub.f32 %v459_v50, %v2373_v16  ;;  %v3167_v45 = vld [vmem:[#allocation18_spill] sm:$0xff] }
 0x12f   :  { %v885_v7 = vsub.f32 %v2548_v24, %v2111_v3  ;;  %1169 = vst [vmem:[#allocation8 + $0x130] sm:$0xff] %v1094_v14  ;;  %v734_v44 = vsel %vm733_vm13, %v2446_v58, %v730_v53  ;;  %1264 = vrsqrt.f32 %v2540_v42  ;;  %v508_v8 = vsub.f32 %v458_v41, %v2377_v23  ;;  %v414_v41 = vpop.xlane.xlu1 %413 }
 0x130   :  { %v1089_v49 = vadd.f32 %v1997_v27, %v1007_v0  ;;  %v1090_v54 = vadd.f32 %v1999_v52, %v1008_v39  ;;  %v1091_v20 = vadd.f32 %v2005_v48, %v1009_v38  ;;  %v3161_v4 = vsub.f32 %v3159_v15, %v3160_v13 }
 0x131   :  { %v3163_v16 = vsub.f32 %v3162_v60, %v3160_v13  ;;  %v3165_v18 = vsub.f32 %v3164_v46, %v3160_v13  ;;  %v534_v17 = vmax.f32 %v509_v9, 0.0  ;;  %v1263_v58 = vpop.eup %1262  ;;  %v2565_v25 = vmul.f32 0.0026041667, %v3166_v62 }
 0x132   :  { %1164 = vst [vmem:[#allocation8 + $0x108] sm:$0xff] %v1089_v49  ;;  %v940_v35 = vmul.f32 %v3161_v4, %v734_v44  ;;  %v533_v23 = vmax.f32 %v508_v8, 0.0  ;;  %v482_v2 = vmul.f32 %v3167_v45, %v3167_v45  ;;  %v457_v36 = vmul.f32 0.0026041667, %v383_v59 }
 0x133   :  { %v941_v28 = vmul.f32 %v3163_v16, %v734_v44  ;;  %v942_v26 = vmul.f32 %v3165_v18, %v734_v44  ;;  %1165 = vst [vmem:[#allocation8 + $0x110] sm:$0xff] %v1090_v54  ;;  %v716_v5 = vmul.f32 %v1263_v58, %v2473_v10  ;;  %v2573_v31 = vadd.f32 1e-05, %v534_v17 }
 0x134   :  { %1166 = vst [vmem:[#allocation8 + $0x118] sm:$0xff] %v1091_v20  ;;  %v1022_v43 = vmul.f32 %v1986_v19, %v940_v35  ;;  %v2575_v56 = vadd.f32 1e-05, %v533_v23  ;;  %v507_v32 = vsub.f32 %v457_v36, %v482_v2  ;;  %v462_v14 = vmul.f32 0.0026041667, %v403_v21  ;;  %v3168_v20 = vld [vmem:[#allocation70_spill] sm:$0xff]  ;;  %v407_v23 = vpop.xlane.xlu0 %406 }
 0x135   :  { %v1023_v51 = vmul.f32 %v1988_v6, %v941_v28  ;;  %v1024_v47 = vmul.f32 %v1990_v29, %v942_v26  ;;  %v717_v0 = vmul.f32 %v1263_v58, %v716_v5  ;;  %v1265_v39 = vpop.eup %1264  ;;  %1266 = vrsqrt.f32 %v2573_v31 }
 0x136   :  { %v1104_v12 = vadd.f32 %v1997_v27, %v1022_v43  ;;  %v532_v38 = vmax.f32 %v507_v32, 0.0  ;;  %v487_v50 = vmul.f32 %v2111_v3, %v2111_v3  ;;  %v486_v53 = vmul.f32 %v2321_v1, %v2321_v1 }
 0x137   :  { %v1105_v59 = vadd.f32 %v1999_v52, %v1023_v51  ;;  %v1106_v63 = vadd.f32 %v2005_v48, %v1024_v47  ;;  %v718_v49 = vmul.f32 0.5, %v717_v0  ;;  %v706_v54 = vmul.f32 %v1265_v39, %v2540_v42  ;;  %v3169_v51 = vld [vmem:[#allocation52_spill] sm:$0xff] }
 0x138   :  { %1179 = vst [vmem:[#allocation8 + $0x180] sm:$0xff] %v1104_v12  ;;  %1268 = vrsqrt.f32 %v2575_v56  ;;  %v2589_v9 = vmul.f32 %v3168_v20, %v3168_v20  ;;  %vm722_vm14 = vweird.f32 %v1263_v58  ;;  %v2591_v44 = vadd.f32 1e-05, %v532_v38  ;;  %v3170_v47 = vld [vmem:[#allocation24_spill] sm:$0xff] }
 0x139   :  { %1180 = vst [vmem:[#allocation8 + $0x188] sm:$0xff] %v1105_v59  ;;  %v512_v8 = vsub.f32 %v462_v14, %v487_v50  ;;  %v461_v15 = vmul.f32 0.0026041667, %v2533_v33  ;;  %v719_v13 = vsub.f32 1.5, %v718_v49  ;;  %v707_v4 = vmul.f32 %v1265_v39, %v706_v54  ;;  %v3172_v14 = vld [vmem:[#allocation53_spill] sm:$0xff] }
 0x13a   :  { %1181 = vst [vmem:[#allocation8 + $0x190] sm:$0xff] %v1106_v63  ;;  %v2594_v35 = vmul.f32 0.0026041667, %v395_v57  ;;  %v2596_v60 = vmul.f32 0.0026041667, %v414_v41  ;;  %1270 = vrsqrt.f32 %v2591_v44  ;;  %v2601_v46 = vmul.f32 %v2565_v25, %v2565_v25  ;;  %v3174_v63 = vld [vmem:[#allocation56_spill] sm:$0xff] }
 0x13b   :  { %v537_v16 = vmax.f32 %v512_v8, 0.0  ;;  %v511_v28 = vsub.f32 %v461_v15, %v486_v53  ;;  %v720_v18 = vmul.f32 %v1263_v58, %v719_v13  ;;  %vm721_vm15 = vweird.f32 %v2473_v10  ;;  %v1267_v33 = vpop.eup %1266 }
 0x13c   :  { %v708_v26 = vmul.f32 0.5, %v707_v4  ;;  %vm711_vm0 = vweird.f32 %v2540_v42  ;;  %vm723_vm1 = vmor %vm721_vm15, %vm722_vm14  ;;  %vm712_vm2 = vweird.f32 %v1265_v39  ;;  %v510_v21 = vsub.f32 %v2594_v35, %v2589_v9  ;;  %v3178_v42 = vld [vmem:[#allocation40_spill] sm:$0xff]  ;;  %v3199_v35 = vld [vmem:[#allocation69_spill] sm:$0xff] }
 0x13d   :  { %v2606_v17 = vadd.f32 1e-05, %v537_v16  ;;  %v514_v62 = vsub.f32 %v2596_v60, %v2601_v46  ;;  %v724_v36 = vsel %vm723_vm1, %v1263_v58, %v720_v18  ;;  %v756_v57 = vmul.f32 %v1267_v33, %v2573_v31  ;;  %vm713_vm5 = vmor %vm711_vm0, %vm712_vm2 }
 0x13e   :  { %v2612_v2 = vpop.eup %1268  ;;  %v709_v10 = vsub.f32 1.5, %v708_v26  ;;  %vm761_vm3 = vweird.f32 %v2573_v31  ;;  %v536_v43 = vmax.f32 %v511_v28, 0.0  ;;  %v3171_v5 = vsub.f32 %v3169_v51, %v3170_v47 }
 0x13f   :  { %v3173_v12 = vsub.f32 %v3172_v14, %v3170_v47  ;;  %v3175_v0 = vsub.f32 %v3174_v63, %v3170_v47  ;;  %v746_v58 = vmul.f32 %v2612_v2, %v2575_v56  ;;  %v757_v53 = vmul.f32 %v1267_v33, %v756_v57 }
 0x140   :  { %v937_v32 = vmul.f32 %v3171_v5, %v724_v36  ;;  %v710_v50 = vmul.f32 %v1265_v39, %v709_v10  ;;  %vm751_vm4 = vweird.f32 %v2575_v56  ;;  %1272 = vrsqrt.f32 %v2606_v17  ;;  %v2631_v49 = vpop.eup %1270 }
 0x141   :  { %v938_v59 = vmul.f32 %v3173_v12, %v724_v36  ;;  %v939_v38 = vmul.f32 %v3175_v0, %v724_v36  ;;  %v2629_v41 = vmul.f32 0.0026041667, %v407_v23  ;;  %v747_v13 = vmul.f32 %v2612_v2, %v746_v58  ;;  %v3176_v36 = vld [vmem:[#allocation39_spill] sm:$0xff] }
 0x142   :  { %v1019_v54 = vmul.f32 %v1986_v19, %v937_v32  ;;  %v714_v4 = vsel %vm713_vm5, %v1265_v39, %v710_v50  ;;  %v758_v16 = vmul.f32 0.5, %v757_v53  ;;  %vm762_vm6 = vweird.f32 %v1267_v33  ;;  %v3180_v39 = vld [vmem:[#allocation45_spill] sm:$0xff] }
 0x143   :  { %v1020_v8 = vmul.f32 %v1988_v6, %v938_v59  ;;  %v1021_v15 = vmul.f32 %v1990_v29, %v939_v38  ;;  %v736_v28 = vmul.f32 %v2631_v49, %v2591_v44  ;;  %v3177_v10 = vsub.f32 %v3176_v36, %v1971_v37  ;;  %vm763_vm9 = vmor %vm761_vm3, %vm762_vm6 }
 0x144   :  { %v1101_v18 = vadd.f32 %v1997_v27, %v1019_v54  ;;  %v3179_v51 = vsub.f32 %v3178_v42, %v1971_v37  ;;  %v3181_v5 = vsub.f32 %v3180_v39, %v1971_v37  ;;  %v759_v14 = vsub.f32 1.5, %v758_v16 }
 0x145   :  { %v1102_v26 = vadd.f32 %v1999_v52, %v1020_v8  ;;  %v1103_v23 = vadd.f32 %v2005_v48, %v1021_v15  ;;  %v934_v57 = vmul.f32 %v3177_v10, %v714_v4  ;;  %v748_v12 = vmul.f32 0.5, %v747_v13  ;;  %v3186_v10 = vld [vmem:[#allocation64_spill] sm:$0xff] }
 0x146   :  { %v935_v47 = vmul.f32 %v3179_v51, %v714_v4  ;;  %v936_v32 = vmul.f32 %v3181_v5, %v714_v4  ;;  %vm741_vm7 = vweird.f32 %v2591_v44  ;;  %1176 = vst [vmem:[#allocation8 + $0x168] sm:$0xff] %v1101_v18  ;;  %vm752_vm8 = vweird.f32 %v2612_v2  ;;  %v2660_v38 = vpop.eup %1272  ;;  %v3197_v44 = vld [vmem:[#allocation54_spill] sm:$0xff] }
 0x147   :  { %v1016_v59 = vmul.f32 %v1986_v19, %v934_v57  ;;  %v737_v63 = vmul.f32 %v2631_v49, %v736_v28  ;;  %v2658_v0 = vadd.f32 1e-05, %v536_v43  ;;  %1177 = vst [vmem:[#allocation8 + $0x170] sm:$0xff] %v1102_v26  ;;  %v760_v50 = vmul.f32 %v1267_v33, %v759_v14  ;;  %v3182_v28 = vld [vmem:[#allocation59_spill] sm:$0xff]  ;;  %v3184_v26 = vld [vmem:[#allocation60_spill] sm:$0xff]  ;;  %vm753_vm12 = vmor %vm751_vm4, %vm752_vm8 }
 0x148   :  { %v1017_v58 = vmul.f32 %v1988_v6, %v935_v47  ;;  %v1018_v37 = vmul.f32 %v1990_v29, %v936_v32  ;;  %v749_v53 = vsub.f32 1.5, %v748_v12  ;;  %1178 = vst [vmem:[#allocation8 + $0x178] sm:$0xff] %v1103_v23  ;;  %vm742_vm10 = vweird.f32 %v2631_v49  ;;  %v3188_v32 = vld [vmem:[#allocation61_spill] sm:$0xff]  ;;  %v3190_v12 = vld [vmem:[#allocation62_spill] sm:$0xff] }
 0x149   :  { %v1098_v54 = vadd.f32 %v1997_v27, %v1016_v59  ;;  %v738_v8 = vmul.f32 0.5, %v737_v63  ;;  %v786_v43 = vmul.f32 %v2660_v38, %v2606_v17  ;;  %v764_v4 = vsel %vm763_vm9, %v1267_v33, %v760_v50  ;;  %vm743_vm14 = vmor %vm741_vm7, %vm742_vm10 }
 0x14a   :  { %v1099_v15 = vadd.f32 %v1999_v52, %v1017_v58  ;;  %v1100_v13 = vadd.f32 %v2005_v48, %v1018_v37  ;;  %v750_v16 = vmul.f32 %v2612_v2, %v749_v53  ;;  %vm791_vm11 = vweird.f32 %v2606_v17 }
 0x14b   :  { %1173 = vst [vmem:[#allocation8 + $0x150] sm:$0xff] %v1098_v54  ;;  %v3183_v31 = vsub.f32 %v3182_v28, %v2058_v55  ;;  %v3185_v23 = vsub.f32 %v3184_v26, %v2058_v55  ;;  %v3187_v57 = vsub.f32 %v3186_v10, %v2058_v55  ;;  %v739_v33 = vsub.f32 1.5, %v738_v8 }
 0x14c   :  { %1174 = vst [vmem:[#allocation8 + $0x158] sm:$0xff] %v1099_v15  ;;  %v754_v51 = vsel %vm753_vm12, %v2612_v2, %v750_v16  ;;  %v787_v47 = vmul.f32 %v2660_v38, %v786_v43  ;;  %vm792_vm13 = vweird.f32 %v2660_v38  ;;  %1274 = vrsqrt.f32 %v2658_v0  ;;  %v3193_v16 = vld [vmem:[#allocation48_spill] sm:$0xff] }
 0x14d   :  { %v949_v18 = vmul.f32 %v3183_v31, %v764_v4  ;;  %v950_v36 = vmul.f32 %v3185_v23, %v764_v4  ;;  %v951_v42 = vmul.f32 %v3187_v57, %v764_v4  ;;  %1175 = vst [vmem:[#allocation8 + $0x160] sm:$0xff] %v1100_v13  ;;  %v3189_v56 = vsub.f32 %v3188_v32, %v2071_v11  ;;  %vm793_vm15 = vmor %vm791_vm11, %vm792_vm13 }
 0x14e   :  { %v3191_v2 = vsub.f32 %v3190_v12, %v2071_v11  ;;  %v3192_v63 = vsub.f32 %v3077_v40, %v2071_v11  ;;  %v740_v37 = vmul.f32 %v2631_v49, %v739_v33  ;;  %v788_v50 = vmul.f32 0.5, %v787_v47 }
 0x14f   :  { %v1031_v39 = vmul.f32 %v1986_v19, %v949_v18  ;;  %v1032_v55 = vmul.f32 %v1988_v6, %v950_v36  ;;  %v1033_v5 = vmul.f32 %v1990_v29, %v951_v42  ;;  %v946_v14 = vmul.f32 %v3189_v56, %v754_v51  ;;  %v3195_v18 = vld [vmem:[#allocation49_spill] sm:$0xff] }
 0x150   :  { %v947_v59 = vmul.f32 %v3191_v2, %v754_v51  ;;  %v948_v58 = vmul.f32 %v3192_v63, %v754_v51  ;;  %v744_v40 = vsel %vm743_vm14, %v2631_v49, %v740_v37  ;;  %v789_v13 = vsub.f32 1.5, %v788_v50  ;;  %v1285_v37 = vld [vmem:[#allocation2 + $0x1f8] sm:$0xff] }
 0x151   :  { %v1113_v53 = vadd.f32 %v1997_v27, %v1031_v39  ;;  %v1114_v54 = vadd.f32 %v1999_v52, %v1032_v55  ;;  %v1115_v8 = vadd.f32 %v2005_v48, %v1033_v5  ;;  %v1028_v43 = vmul.f32 %v1986_v19, %v946_v14 }
 0x152   :  { %v1029_v15 = vmul.f32 %v1988_v6, %v947_v59  ;;  %v1030_v11 = vmul.f32 %v1990_v29, %v948_v58  ;;  %v3194_v28 = vsub.f32 %v3193_v16, %v3167_v45  ;;  %v3196_v26 = vsub.f32 %v3195_v18, %v3167_v45  ;;  %v1275_v57 = vpop.eup %1274 }
 0x153   :  { %1188 = vst [vmem:[#allocation8 + $0x1c8] sm:$0xff] %v1113_v53  ;;  %v1110_v4 = vadd.f32 %v1997_v27, %v1028_v43  ;;  %v3198_v36 = vsub.f32 %v3197_v44, %v3167_v45  ;;  %v790_v33 = vmul.f32 %v2660_v38, %v789_v13  ;;  %v535_v51 = vmax.f32 %v510_v21, 0.0  ;;  %v1287_v43 = vld [vmem:[#allocation2 + $0x208] sm:$0xff] }
 0x154   :  { %v943_v31 = vmul.f32 %v3194_v28, %v744_v40  ;;  %v944_v23 = vmul.f32 %v3196_v26, %v744_v40  ;;  %1189 = vst [vmem:[#allocation8 + $0x1d0] sm:$0xff] %v1114_v54  ;;  %v1111_v49 = vadd.f32 %v1999_v52, %v1029_v15  ;;  %v1112_v42 = vadd.f32 %v2005_v48, %v1030_v11  ;;  %v1286_v54 = vld [vmem:[#allocation2 + $0x200] sm:$0xff] }
 0x155   :  { %v945_v10 = vmul.f32 %v3198_v36, %v744_v40  ;;  %1190 = vst [vmem:[#allocation8 + $0x1d8] sm:$0xff] %v1115_v8  ;;  %v776_v55 = vmul.f32 %v1275_v57, %v2658_v0  ;;  %v794_v5 = vsel %vm793_vm15, %v2660_v38, %v790_v33  ;;  %v2741_v32 = vadd.f32 1e-05, %v535_v51 }
 0x156   :  { %v1025_v47 = vmul.f32 %v1986_v19, %v943_v31  ;;  %v1026_v39 = vmul.f32 %v1988_v6, %v944_v23  ;;  %1185 = vst [vmem:[#allocation8 + $0x1b0] sm:$0xff] %v1110_v4  ;;  %v539_v9 = vmax.f32 %v514_v62, 0.0  ;;  %v488_v21 = vmul.f32 %v3199_v35, %v3199_v35 }
 0x157   :  { %v1027_v45 = vmul.f32 %v1990_v29, %v945_v10  ;;  %1186 = vst [vmem:[#allocation8 + $0x1b8] sm:$0xff] %v1111_v49  ;;  %v958_v38 = vmul.f32 %v883_v22, %v794_v5  ;;  %v959_v60 = vmul.f32 %v884_v30, %v794_v5  ;;  %v960_v46 = vmul.f32 %v885_v7, %v794_v5 }
 0x158   :  { %v1107_v56 = vadd.f32 %v1997_v27, %v1025_v47  ;;  %v1108_v17 = vadd.f32 %v1999_v52, %v1026_v39  ;;  %1187 = vst [vmem:[#allocation8 + $0x1c0] sm:$0xff] %v1112_v42  ;;  %v777_v62 = vmul.f32 %v1275_v57, %v776_v55  ;;  %1276 = vrsqrt.f32 %v2741_v32  ;;  %v1288_v47 = vld [vmem:[#allocation2 + $0x1e0] sm:$0xff] }
 0x159   :  { %v1109_v14 = vadd.f32 %v2005_v48, %v1027_v45  ;;  %v1040_v12 = vmul.f32 %v1986_v19, %v958_v38  ;;  %v2762_v2 = vadd.f32 1e-05, %v539_v9  ;;  %v513_v34 = vsub.f32 %v2629_v41, %v488_v21  ;;  %v1289_v45 = vld [vmem:[#allocation2 + $0x1e8] sm:$0xff]  ;;  %v1290_v9 = vld [vmem:[#allocation2 + $0x1f0] sm:$0xff] }
 0x15a   :  { %1182 = vst [vmem:[#allocation8 + $0x198] sm:$0xff] %v1107_v56  ;;  %v1041_v22 = vmul.f32 %v1988_v6, %v959_v60  ;;  %v1042_v61 = vmul.f32 %v1990_v29, %v960_v46  ;;  %v778_v30 = vmul.f32 0.5, %v777_v62  ;;  %vm782_vm0 = vweird.f32 %v1275_v57 }
 0x15b   :  { %1183 = vst [vmem:[#allocation8 + $0x1a0] sm:$0xff] %v1108_v17  ;;  %v1122_v3 = vadd.f32 %v1997_v27, %v1040_v12  ;;  %1278 = vrsqrt.f32 %v2762_v2  ;;  %v538_v24 = vmax.f32 %v513_v34, 0.0  ;;  %v880_v50 = vsub.f32 %v1285_v37, %v2321_v1  ;;  %v1292_v34 = vld [vmem:[#allocation2 + $0x248] sm:$0xf] }
 0x15c   :  { %1184 = vst [vmem:[#allocation8 + $0x1a8] sm:$0xff] %v1109_v14  ;;  %v1123_v7 = vadd.f32 %v1999_v52, %v1041_v22  ;;  %v1124_v59 = vadd.f32 %v2005_v48, %v1042_v61  ;;  %v779_v63 = vsub.f32 1.5, %v778_v30  ;;  %vm781_vm1 = vweird.f32 %v2658_v0  ;;  %v1291_v14 = vld [vmem:[#allocation2 + $0x240] sm:$0xf]  ;;  %v1293_v22 = vld [vmem:[#allocation2 + $0x250] sm:$0xf] }
 0x15d   :  { %1197 = vst [vmem:[#allocation8 + $0x210] sm:$0xff] %v1122_v3  ;;  %v2771_v41 = vadd.f32 1e-05, %v538_v24  ;;  %v881_v8 = vsub.f32 %v1286_v54, %v2321_v1  ;;  %v882_v15 = vsub.f32 %v1287_v43, %v2321_v1  ;;  %vm783_vm2 = vmor %vm781_vm1, %vm782_vm0  ;;  %v877_v39 = vsub.f32 %v1288_v47, %v3168_v20 }
 0x15e   :  { %v1277_v58 = vpop.eup %1276  ;;  %1198 = vst [vmem:[#allocation8 + $0x218] sm:$0xff] %v1123_v7  ;;  %v780_v53 = vmul.f32 %v1275_v57, %v779_v63  ;;  %v878_v55 = vsub.f32 %v1289_v45, %v3168_v20  ;;  %vm771_vm4 = vweird.f32 %v2741_v32  ;;  %v879_v21 = vsub.f32 %v1290_v9, %v3168_v20 }
 0x15f   :  { %1199 = vst [vmem:[#allocation8 + $0x220] sm:$0xff] %v1124_v59  ;;  %v766_v11 = vmul.f32 %v1277_v58, %v2741_v32  ;;  %1280 = vrsqrt.f32 %v2771_v41  ;;  %vm772_vm3 = vweird.f32 %v1277_v58  ;;  %v889_v38 = vsub.f32 %v1291_v14, %v2565_v25 }
 0x160   :  { %v784_v40 = vsel %vm783_vm2, %v1275_v57, %v780_v53  ;;  %vm773_vm5 = vmor %vm771_vm4, %vm772_vm3  ;;  %vm811_vm7 = vweird.f32 %v2762_v2  ;;  %v890_v20 = vsub.f32 %v1292_v34, %v2565_v25  ;;  %v891_v61 = vsub.f32 %v1293_v22, %v2565_v25 }
 0x161   :  { %v1279_v13 = vpop.eup %1278  ;;  %v955_v4 = vmul.f32 %v880_v50, %v784_v40  ;;  %v956_v16 = vmul.f32 %v881_v8, %v784_v40  ;;  %v957_v28 = vmul.f32 %v882_v15, %v784_v40  ;;  %v767_v31 = vmul.f32 %v1277_v58, %v766_v11  ;;  %v1294_v11 = vld [vmem:[#allocation2 + $0x228] sm:$0xff] }
 0x162   :  { %v806_v0 = vmul.f32 %v1279_v13, %v2762_v2  ;;  %vm812_vm6 = vweird.f32 %v1279_v13  ;;  %vm801_vm10 = vweird.f32 %v2771_v41  ;;  %v886_v40 = vsub.f32 %v1294_v11, %v3199_v35 }
 0x163   :  { %v1037_v18 = vmul.f32 %v1986_v19, %v955_v4  ;;  %v1038_v26 = vmul.f32 %v1988_v6, %v956_v16  ;;  %v1039_v1 = vmul.f32 %v1990_v29, %v957_v28  ;;  %v768_v23 = vmul.f32 0.5, %v767_v31  ;;  %vm813_vm8 = vmor %vm811_vm7, %vm812_vm6  ;;  %v1296_v16 = vld [vmem:[#allocation2 + $0x238] sm:$0xff] }
 0x164   :  { %v807_v44 = vmul.f32 %v1279_v13, %v806_v0  ;;  %v888_v28 = vsub.f32 %v1296_v16, %v3199_v35 }
 0x165   :  { %v2783_v36 = vpop.eup %1280  ;;  %v1119_v10 = vadd.f32 %v1997_v27, %v1037_v18  ;;  %v1120_v57 = vadd.f32 %v1999_v52, %v1038_v26  ;;  %v1121_v49 = vadd.f32 %v2005_v48, %v1039_v1  ;;  %v769_v42 = vsub.f32 1.5, %v768_v23 }
 0x166   :  { %v808_v33 = vmul.f32 0.5, %v807_v44  ;;  %v796_v51 = vmul.f32 %v2783_v36, %v2771_v41  ;;  %vm802_vm9 = vweird.f32 %v2783_v36 }
 0x167   :  { %1194 = vst [vmem:[#allocation8 + $0x1f8] sm:$0xff] %v1119_v10  ;;  %v770_v5 = vmul.f32 %v1277_v58, %v769_v42  ;;  %vm803_vm11 = vmor %vm801_vm10, %vm802_vm9 }
 0x168   :  { %1195 = vst [vmem:[#allocation8 + $0x200] sm:$0xff] %v1120_v57  ;;  %v809_v56 = vsub.f32 1.5, %v808_v33  ;;  %v797_v17 = vmul.f32 %v2783_v36, %v796_v51 }
 0x169   :  { %1196 = vst [vmem:[#allocation8 + $0x208] sm:$0xff] %v1121_v49  ;;  %v774_v60 = vsel %vm773_vm5, %v1277_v58, %v770_v5 }
 0x16a   :  { %v952_v46 = vmul.f32 %v877_v39, %v774_v60  ;;  %v953_v62 = vmul.f32 %v878_v55, %v774_v60  ;;  %v954_v32 = vmul.f32 %v879_v21, %v774_v60  ;;  %v810_v12 = vmul.f32 %v1279_v13, %v809_v56 }
 0x16b   :  { %v798_v30 = vmul.f32 0.5, %v797_v17 }
 0x16c   :  { %v1034_v3 = vmul.f32 %v1986_v19, %v952_v46  ;;  %v1035_v24 = vmul.f32 %v1988_v6, %v953_v62  ;;  %v1036_v2 = vmul.f32 %v1990_v29, %v954_v32  ;;  %v814_v7 = vsel %vm813_vm8, %v1279_v13, %v810_v12  ;;  %v1295_v13 = vld [vmem:[#allocation2 + $0x230] sm:$0xff] }
 0x16d   :  { %v964_v59 = vmul.f32 %v889_v38, %v814_v7  ;;  %v965_v63 = vmul.f32 %v890_v20, %v814_v7  ;;  %v966_v58 = vmul.f32 %v891_v61, %v814_v7  ;;  %v799_v37 = vsub.f32 1.5, %v798_v30 }
 0x16e   :  { %v1116_v50 = vadd.f32 %v1997_v27, %v1034_v3  ;;  %v1117_v25 = vadd.f32 %v1999_v52, %v1035_v24  ;;  %v1118_v53 = vadd.f32 %v2005_v48, %v1036_v2  ;;  %v887_v4 = vsub.f32 %v1295_v13, %v3199_v35 }
 0x16f   :  { %v1046_v54 = vmul.f32 %v1986_v19, %v964_v59  ;;  %v1047_v8 = vmul.f32 %v1988_v6, %v965_v63  ;;  %v1048_v43 = vmul.f32 %v1990_v29, %v966_v58  ;;  %v800_v15 = vmul.f32 %v2783_v36, %v799_v37 }
 0x170   :  { %1191 = vst [vmem:[#allocation8 + $0x1e0] sm:$0xff] %v1116_v50 }
 0x171   :  { %1192 = vst [vmem:[#allocation8 + $0x1e8] sm:$0xff] %v1117_v25  ;;  %v1128_v41 = vadd.f32 %v1997_v27, %v1046_v54  ;;  %v1129_v31 = vadd.f32 %v1999_v52, %v1047_v8  ;;  %v1130_v0 = vadd.f32 %v2005_v48, %v1048_v43  ;;  %v804_v18 = vsel %vm803_vm11, %v2783_v36, %v800_v15 }
 0x172   :  { %1193 = vst [vmem:[#allocation8 + $0x1f0] sm:$0xff] %v1118_v53  ;;  %v961_v26 = vmul.f32 %v886_v40, %v804_v18  ;;  %v962_v1 = vmul.f32 %v887_v4, %v804_v18  ;;  %v963_v23 = vmul.f32 %v888_v28, %v804_v18 }
 0x173   :  { %1203 = vst [vmem:[#allocation8 + $0x240] sm:$0xf] %v1128_v41 }
 0x174   :  { %1204 = vst [vmem:[#allocation8 + $0x248] sm:$0xf] %v1129_v31  ;;  %v1043_v35 = vmul.f32 %v1986_v19, %v961_v26  ;;  %v1044_v44 = vmul.f32 %v1988_v6, %v962_v1  ;;  %v1045_v10 = vmul.f32 %v1990_v29, %v963_v23 }
 0x175   :  { %1205 = vst [vmem:[#allocation8 + $0x250] sm:$0xf] %v1130_v0 }
 0x176   :  { %v1125_v36 = vadd.f32 %v1997_v27, %v1043_v35  ;;  %v1126_v57 = vadd.f32 %v1999_v52, %v1044_v44  ;;  %v1127_v49 = vadd.f32 %v2005_v48, %v1045_v10 }
 0x178   :  { %1200 = vst [vmem:[#allocation8 + $0x228] sm:$0xff] %v1125_v36 }
 0x179   :  { %1201 = vst [vmem:[#allocation8 + $0x230] sm:$0xff] %v1126_v57 }
 0x17a   :  { %1202 = vst [vmem:[#allocation8 + $0x238] sm:$0xff] %v1127_v49 }
 0x17b   :  { %1218 = dma.vmem_to_hbm [thread:$0]  %s1211_s2, 9600, %s1213_s30, [#allocation4], %s1401_s22, %s1401_s22, %s1402_s23  }
 0x17c   :  { %1397 = dma.done.wait [#allocation4], 9600  }
 0x17d   :  { %1398 = vsyncadd [#allocation4], 4294957696 }
 0x17e   :  { %1223 = vsyncpa [#allocation3], 1 }
 0x17f   :  { %1224 = vsyncpa [#allocation6], 1 }
 0x180   :  { %1225 = vsyncpa [#allocation4], 1 }

</bundles_post_ra>
